<compile_context>
chip_gen: v6e
topology: v6e:2x2x1
jax: 0.10.0
libtpu: 0.0.40
codegen_flags: <defaults>
</compile_context>

<pallas_src>
import jax
import jax.numpy as jnp
import numpy as np
from jax.experimental import pallas as pl
from jax.experimental.pallas import tpu as pltpu

BN_EPS = 1e-5
NEG_INF = -1e30                       # finite "-inf": a 3x3/pad=1 window is never all-pad
LANE = 128
MAX_TILE_LANES = 16 * 1024            # keep tiles in the 2K-16K lane sweet spot
MAX_TILE_BYTES = 2 * 1024 * 1024      # per x-tile budget (~4x with in/out double buffering)


def _shift(x, d, mb):
    """result[:, m] = x[:, (m + d) mod mb] via an XLU lane rotate."""
    sh = (-d) % mb                    # jnp.roll semantics: out[m] = in[m - shift]
    if sh == 0:
        return x
    return pltpu.roll(x, sh, axis=1)


def _make_stats_kernel(img_w, mb):
    def kernel(x_ref, mask_ref, stats_ref):
        # x_ref    : (C, MB) f32 tile
        # mask_ref : (9, MB) f32 {0,1} per-tap validity (0 on pad columns)
        # stats_ref: (1, C, 4) f32 per-tile [sum(s), sum(s^2), sum(mx), sum(mx^2)]
        #            where s = 3x3 zero-padded SUM (1/9 folded in at finalize).
        x = x_ref[...]
        s = jnp.zeros_like(x)
        mx = jnp.full_like(x, NEG_INF)
        for k in range(9):
            oy, ox = k // 3 - 1, k % 3 - 1
            shifted = _shift(x, oy * img_w + ox, mb)
            mk = mask_ref[k:k + 1, :]
            s = s + shifted * mk
            mx = jnp.maximum(mx, jnp.where(mk != 0, shifted, NEG_INF))
        # center tap (k=4) is valid on every real pixel -> use it to exclude
        # zero-pad columns from the BN sums (mask BEFORE squaring: avoids inf).
        colmask = mask_ref[4:5, :]
        mxm = jnp.where(colmask != 0, mx, 0.0)
        # TODO(synk): single-pass E[y^2]-mu^2 is cancellation-prone for large
        # |mean|/std; switch to shifted/two-pass stats for real activations.
        stats_ref[0] = jnp.concatenate(
            [jnp.sum(s, axis=1, keepdims=True),
             jnp.sum(s * s, axis=1, keepdims=True),
             jnp.sum(mxm, axis=1, keepdims=True),
             jnp.sum(mxm * mxm, axis=1, keepdims=True)], axis=1)
    return kernel


def _make_apply_kernel(img_w, mb):
    def kernel(x_ref, mask_ref, w_ref, par_ref, o_ref):
        # x_ref   : (C, MB) f32 tile
        # mask_ref: (9, MB) f32 {0,1}
        # w_ref   : (9, C, C) f32 tap-major conv weight (alpha[1] folded in)
        # par_ref : (C, 4) f32 per-channel [scale_s, scale_m, bias, alpha0]
        # o_ref   : (C, MB) f32 output tile
        x = x_ref[...]
        scale_s = par_ref[:, 0:1]     # alpha[2]*rsqrt(var_avg+eps)/9, applied to raw sum
        scale_m = par_ref[:, 1:2]     # alpha[3]*rsqrt(var_max+eps)
        bias = par_ref[:, 2:3]        # -(mu_avg*g_a + mu_max*g_m)
        alpha0 = par_ref[:, 3:4]
        acc = alpha0 * x              # skip_connect branch
        mx = jnp.full_like(x, NEG_INF)
        for k in range(9):            # taps consumed immediately -> low vreg pressure
            oy, ox = k // 3 - 1, k % 3 - 1
            shifted = _shift(x, oy * img_w + ox, mb)
            mk = mask_ref[k:k + 1, :]
            tz = shifted * mk
            acc = acc + scale_s * tz                                   # avg-pool branch
            acc = acc + jnp.dot(w_ref[k], tz,
                                preferred_element_type=jnp.float32)    # conv branch
            mx = jnp.maximum(mx, jnp.where(mk != 0, shifted, NEG_INF)) # max-pool branch
        o_ref[...] = (acc + scale_m * mx + bias).astype(o_ref.dtype)
    return kernel


def mixed_op(x_nchw, conv_w_oihw, alpha):
    """x_nchw: (N, C, H, W), conv_w_oihw: (C, C, 3, 3), alpha: (4,) -> (N, C, H, W)."""
    N, C, H, W = x_nchw.shape
    HW = H * W
    M = N * HW

    # ---- tile picker: LARGEST whole-image tile under the lane & byte budgets
    lane_budget = max(HW, min(MAX_TILE_LANES, MAX_TILE_BYTES // (4 * C)))
    nb = 1
    for cand in range(1, N + 1):
        if N % cand == 0 and cand * HW <= lane_budget:
            nb = cand
    mb_raw = nb * HW
    mb = ((mb_raw + LANE - 1) // LANE) * LANE   # lane-dense; pad columns if needed
    num_tiles = N // nb

    # ---- lane-dense layout (channels on sublanes, flattened pixels on lanes)
    x_cm = jnp.transpose(x_nchw, (1, 0, 2, 3)).reshape(C, num_tiles, mb_raw)
    x_cm = jnp.pad(x_cm.astype(jnp.float32), ((0, 0), (0, 0), (0, mb - mb_raw)))
    x_cm = x_cm.reshape(C, num_tiles * mb)

    # ---- conv weight, tap-major (9, C, C); fold alpha[1] in
    w_taps = jnp.transpose(conv_w_oihw.astype(jnp.float32).reshape(C, C, 9), (2, 0, 1))
    w_taps = alpha[1].astype(jnp.float32) * w_taps

    # ---- per-tap boundary masks (static numpy; pad columns invalid for every tap)
    ys, xs = np.meshgrid(np.arange(H), np.arange(W), indexing="ij")
    mask_rows = []
    for k in range(9):
        oy, ox = k // 3 - 1, k % 3 - 1
        valid = ((ys + oy >= 0) & (ys + oy < H) &
                 (xs + ox >= 0) & (xs + ox < W)).reshape(-1)
        valid = np.pad(np.tile(valid, nb), (0, mb - mb_raw))
        mask_rows.append(valid.astype(np.float32))
    mask_arr = jnp.asarray(np.stack(mask_rows))          # (9, mb)

    cparams = pltpu.CompilerParams(
        dimension_semantics=("parallel",),               # no cross-tile state -> megacore OK
        vmem_limit_bytes=32 * 1024 * 1024)               # above v5e's 16 MiB scoped default

    # ---- pass 1: per-tile BN partial statistics for the two pool branches
    stats = pl.pallas_call(
        _make_stats_kernel(W, mb),
        out_shape=jax.ShapeDtypeStruct((num_tiles, C, 4), jnp.float32),
        grid=(num_tiles,),
        in_specs=[pl.BlockSpec((C, mb), lambda t: (0, t)),
                  pl.BlockSpec((9, mb), lambda t: (0, 0))],
        out_specs=pl.BlockSpec((1, C, 4), lambda t: (t, 0, 0)),
        compiler_params=cparams,
    )(x_cm, mask_arr)

    # ---- finalize BN stats once + fold alphas (tiny jnp glue between the calls)
    tot = jnp.sum(stats, axis=0)                         # (C, 4)
    inv_count = 1.0 / M
    mu_s = tot[:, 0] * inv_count                         # stats of the raw 3x3 SUM
    var_s = tot[:, 1] * inv_count - mu_s * mu_s
    g_a = alpha[2].astype(jnp.float32) * jax.lax.rsqrt(var_s / 81.0 + BN_EPS)
    mu_m = tot[:, 2] * inv_count
    var_m = tot[:, 3] * inv_count - mu_m * mu_m
    g_m = alpha[3].astype(jnp.float32) * jax.lax.rsqrt(var_m + BN_EPS)
    scale_s = g_a / 9.0                                  # avg = s/9, applied directly to s
    bias = -(mu_s / 9.0) * g_a - mu_m * g_m
    alpha0 = jnp.full((C,), alpha[0], jnp.float32)
    params = jnp.stack([scale_s, g_m, bias, alpha0], axis=1)   # (C, 4)

    # ---- pass 2: apply skip + conv + BN(avg-pool) + BN(max-pool)
    out_cm = pl.pallas_call(
        _make_apply_kernel(W, mb),
        out_shape=jax.ShapeDtypeStruct((C, num_tiles * mb), jnp.float32),
        grid=(num_tiles,),
        in_specs=[pl.BlockSpec((C, mb), lambda t: (0, t)),
                  pl.BlockSpec((9, mb), lambda t: (0, 0)),
                  pl.BlockSpec((9, C, C), lambda t: (0, 0, 0)),
                  pl.BlockSpec((C, 4), lambda t: (0, 0))],
        out_specs=pl.BlockSpec((C, mb), lambda t: (0, t)),
        compiler_params=cparams,
    )(x_cm, mask_arr, w_taps, params)

    out = out_cm.reshape(C, num_tiles, mb)[:, :, :mb_raw].reshape(C, N, H, W)
    return jnp.transpose(out, (1, 0, 2, 3))


def reference_mixed_op(x, conv_w, alpha):
    """Pure-JAX reference of the same MixedOp forward (NCHW)."""
    def bn(y):
        mu = y.mean(axis=(0, 2, 3), keepdims=True)
        var = ((y - mu) ** 2).mean(axis=(0, 2, 3), keepdims=True)
        return (y - mu) * jax.lax.rsqrt(var + BN_EPS)

    y0 = x
    y1 = jax.lax.conv_general_dilated(
        x, conv_w, (1, 1), ((1, 1), (1, 1)),
        dimension_numbers=('NCHW', 'OIHW', 'NCHW'))
    pad = [(0, 0), (0, 0), (1, 1), (1, 1)]
    y2 = jax.lax.reduce_window(x, 0.0, jax.lax.add,
                               (1, 1, 3, 3), (1, 1, 1, 1), pad) / 9.0
    y3 = jax.lax.reduce_window(x, -jnp.inf, jax.lax.max,
                               (1, 1, 3, 3), (1, 1, 1, 1), pad)
    return alpha[0] * y0 + alpha[1] * y1 + alpha[2] * bn(y2) + alpha[3] * bn(y3)


if __name__ == "__main__":
    key = jax.random.PRNGKey(0)
    k_x, k_w, k_a = jax.random.split(key, 3)

    N, C, H, W = 2, 4, 16, 16           # batch=2, channels=4, spatial=16
    x = jax.random.normal(k_x, (N, C, H, W), jnp.float32)
    conv_w = 0.1 * jax.random.normal(k_w, (C, C, 3, 3), jnp.float32)
    # architecture weights (as produced upstream by a softmax in DARTS)
    alpha = jax.nn.softmax(jax.random.normal(k_a, (4,), jnp.float32))

    out = jax.block_until_ready(jax.jit(mixed_op)(x, conv_w, alpha))

    ref = reference_mixed_op(x, conv_w, alpha)
    np.testing.assert_allclose(np.asarray(out), np.asarray(ref),
                               rtol=1e-4, atol=1e-4)
    print("KERNEL_OK")
</pallas_src>

<mosaic_0001>
module attributes {stable_mosaic.version = 11 : i64} {
  func.func @kernel(%arg0: i32, %arg1: memref<4x512xf32, #tpu.memory_space<vmem>>, %arg2: memref<9x512xf32, #tpu.memory_space<vmem>>, %arg3: memref<9x4x4xf32, #tpu.memory_space<vmem>>, %arg4: memref<4x4xf32, #tpu.memory_space<vmem>>, %arg5: memref<4x512xf32, #tpu.memory_space<vmem>>) attributes {dimension_semantics = [#tpu.dimension_semantics<parallel>], iteration_bounds = array<i64: 1>, scalar_prefetch = 0 : i64, scratch_operands = 0 : i64, tpu.core_type = #tpu.core_type<tc>, window_params = [{transform_indices = @transform_0, window_bounds = array<i64: 4, 512>}, {pipeline_mode = #tpu.pipeline_mode<synchronous>, transform_indices = @transform_1, window_bounds = array<i64: 9, 512>}, {pipeline_mode = #tpu.pipeline_mode<synchronous>, transform_indices = @transform_2, window_bounds = array<i64: 9, 4, 4>}, {pipeline_mode = #tpu.pipeline_mode<synchronous>, transform_indices = @transform_3, window_bounds = array<i64: 4, 4>}, {transform_indices = @transform_4, window_bounds = array<i64: 4, 512>}]} {
    %c0 = arith.constant 0 : index
    %c0_0 = arith.constant 0 : index
    %0 = vector.load %arg1[%c0, %c0_0] : memref<4x512xf32, #tpu.memory_space<vmem>>, vector<4x512xf32>
    %c0_1 = arith.constant 0 : index
    %c0_2 = arith.constant 0 : index
    %1 = vector.load %arg4[%c0_1, %c0_2] : memref<4x4xf32, #tpu.memory_space<vmem>>, vector<4x1xf32>
    %c0_3 = arith.constant 0 : index
    %c1 = arith.constant 1 : index
    %2 = vector.load %arg4[%c0_3, %c1] : memref<4x4xf32, #tpu.memory_space<vmem>>, vector<4x1xf32>
    %c0_4 = arith.constant 0 : index
    %c2 = arith.constant 2 : index
    %3 = vector.load %arg4[%c0_4, %c2] : memref<4x4xf32, #tpu.memory_space<vmem>>, vector<4x1xf32>
    %c0_5 = arith.constant 0 : index
    %c3 = arith.constant 3 : index
    %4 = vector.load %arg4[%c0_5, %c3] : memref<4x4xf32, #tpu.memory_space<vmem>>, vector<4x1xf32>
    %5 = vector.broadcast %4 : vector<4x1xf32> to vector<4x512xf32>
    %6 = arith.mulf %5, %0 : vector<4x512xf32>
    %cst = arith.constant -1.000000e+30 : f32
    %7 = vector.broadcast %cst : f32 to vector<4x512xf32>
    %c17_i32 = arith.constant 17 : i32
    %8 = tpu.dynamic_rotate %0 by %c17_i32 dim 1 : vector<4x512xf32>, i32 -> vector<4x512xf32>
    %c0_6 = arith.constant 0 : index
    %c0_7 = arith.constant 0 : index
    %9 = vector.load %arg2[%c0_6, %c0_7] : memref<9x512xf32, #tpu.memory_space<vmem>>, vector<1x512xf32>
    %10 = vector.broadcast %9 : vector<1x512xf32> to vector<4x512xf32>
    %11 = arith.mulf %8, %10 : vector<4x512xf32>
    %12 = vector.broadcast %1 : vector<4x1xf32> to vector<4x512xf32>
    %13 = arith.mulf %12, %11 : vector<4x512xf32>
    %14 = arith.addf %6, %13 : vector<4x512xf32>
    %c0_8 = arith.constant 0 : index
    %c0_9 = arith.constant 0 : index
    %c0_10 = arith.constant 0 : index
    %15 = vector.load %arg3[%c0_8, %c0_9, %c0_10] : memref<9x4x4xf32, #tpu.memory_space<vmem>>, vector<1x4x4xf32>
    %16 = vector.shape_cast %15 : vector<1x4x4xf32> to vector<4x4xf32>
    %cst_11 = arith.constant dense<0.000000e+00> : vector<4x512xf32>
    %17 = tpu.matmul %16, %11, %cst_11 {dimension_numbers = #tpu.dot_dimension_numbers<[1], [0], [0], [1], [0, 0, 1, 1], [], []>} : vector<4x4xf32>, vector<4x512xf32>, vector<4x512xf32> -> vector<4x512xf32>
    %18 = arith.addf %14, %17 : vector<4x512xf32>
    %cst_12 = arith.constant 0.000000e+00 : f32
    %19 = vector.broadcast %cst_12 : f32 to vector<1x512xf32>
    %20 = arith.cmpf one, %9, %19 : vector<1x512xf32>
    %cst_13 = arith.constant -1.000000e+30 : f32
    %21 = vector.shape_cast %20 : vector<1x512xi1> to vector<1x512xi1>
    %22 = vector.broadcast %21 : vector<1x512xi1> to vector<4x512xi1>
    %23 = vector.broadcast %cst_13 : f32 to vector<4x512xf32>
    %24 = arith.select %22, %8, %23 : vector<4x512xi1>, vector<4x512xf32>
    %25 = arith.maximumf %7, %24 : vector<4x512xf32>
    %c16_i32 = arith.constant 16 : i32
    %26 = tpu.dynamic_rotate %0 by %c16_i32 dim 1 : vector<4x512xf32>, i32 -> vector<4x512xf32>
    %c1_14 = arith.constant 1 : index
    %c0_15 = arith.constant 0 : index
    %27 = vector.load %arg2[%c1_14, %c0_15] : memref<9x512xf32, #tpu.memory_space<vmem>>, vector<1x512xf32>
    %28 = vector.broadcast %27 : vector<1x512xf32> to vector<4x512xf32>
    %29 = arith.mulf %26, %28 : vector<4x512xf32>
    %30 = vector.broadcast %1 : vector<4x1xf32> to vector<4x512xf32>
    %31 = arith.mulf %30, %29 : vector<4x512xf32>
    %32 = arith.addf %18, %31 : vector<4x512xf32>
    %c1_16 = arith.constant 1 : index
    %c0_17 = arith.constant 0 : index
    %c0_18 = arith.constant 0 : index
    %33 = vector.load %arg3[%c1_16, %c0_17, %c0_18] : memref<9x4x4xf32, #tpu.memory_space<vmem>>, vector<1x4x4xf32>
    %34 = vector.shape_cast %33 : vector<1x4x4xf32> to vector<4x4xf32>
    %cst_19 = arith.constant dense<0.000000e+00> : vector<4x512xf32>
    %35 = tpu.matmul %34, %29, %cst_19 {dimension_numbers = #tpu.dot_dimension_numbers<[1], [0], [0], [1], [0, 0, 1, 1], [], []>} : vector<4x4xf32>, vector<4x512xf32>, vector<4x512xf32> -> vector<4x512xf32>
    %36 = arith.addf %32, %35 : vector<4x512xf32>
    %cst_20 = arith.constant 0.000000e+00 : f32
    %37 = vector.broadcast %cst_20 : f32 to vector<1x512xf32>
    %38 = arith.cmpf one, %27, %37 : vector<1x512xf32>
    %cst_21 = arith.constant -1.000000e+30 : f32
    %39 = vector.shape_cast %38 : vector<1x512xi1> to vector<1x512xi1>
    %40 = vector.broadcast %39 : vector<1x512xi1> to vector<4x512xi1>
    %41 = vector.broadcast %cst_21 : f32 to vector<4x512xf32>
    %42 = arith.select %40, %26, %41 : vector<4x512xi1>, vector<4x512xf32>
    %43 = arith.maximumf %25, %42 : vector<4x512xf32>
    %c15_i32 = arith.constant 15 : i32
    %44 = tpu.dynamic_rotate %0 by %c15_i32 dim 1 : vector<4x512xf32>, i32 -> vector<4x512xf32>
    %c2_22 = arith.constant 2 : index
    %c0_23 = arith.constant 0 : index
    %45 = vector.load %arg2[%c2_22, %c0_23] : memref<9x512xf32, #tpu.memory_space<vmem>>, vector<1x512xf32>
    %46 = vector.broadcast %45 : vector<1x512xf32> to vector<4x512xf32>
    %47 = arith.mulf %44, %46 : vector<4x512xf32>
    %48 = vector.broadcast %1 : vector<4x1xf32> to vector<4x512xf32>
    %49 = arith.mulf %48, %47 : vector<4x512xf32>
    %50 = arith.addf %36, %49 : vector<4x512xf32>
    %c2_24 = arith.constant 2 : index
    %c0_25 = arith.constant 0 : index
    %c0_26 = arith.constant 0 : index
    %51 = vector.load %arg3[%c2_24, %c0_25, %c0_26] : memref<9x4x4xf32, #tpu.memory_space<vmem>>, vector<1x4x4xf32>
    %52 = vector.shape_cast %51 : vector<1x4x4xf32> to vector<4x4xf32>
    %cst_27 = arith.constant dense<0.000000e+00> : vector<4x512xf32>
    %53 = tpu.matmul %52, %47, %cst_27 {dimension_numbers = #tpu.dot_dimension_numbers<[1], [0], [0], [1], [0, 0, 1, 1], [], []>} : vector<4x4xf32>, vector<4x512xf32>, vector<4x512xf32> -> vector<4x512xf32>
    %54 = arith.addf %50, %53 : vector<4x512xf32>
    %cst_28 = arith.constant 0.000000e+00 : f32
    %55 = vector.broadcast %cst_28 : f32 to vector<1x512xf32>
    %56 = arith.cmpf one, %45, %55 : vector<1x512xf32>
    %cst_29 = arith.constant -1.000000e+30 : f32
    %57 = vector.shape_cast %56 : vector<1x512xi1> to vector<1x512xi1>
    %58 = vector.broadcast %57 : vector<1x512xi1> to vector<4x512xi1>
    %59 = vector.broadcast %cst_29 : f32 to vector<4x512xf32>
    %60 = arith.select %58, %44, %59 : vector<4x512xi1>, vector<4x512xf32>
    %61 = arith.maximumf %43, %60 : vector<4x512xf32>
    %c1_i32 = arith.constant 1 : i32
    %62 = tpu.dynamic_rotate %0 by %c1_i32 dim 1 : vector<4x512xf32>, i32 -> vector<4x512xf32>
    %c3_30 = arith.constant 3 : index
    %c0_31 = arith.constant 0 : index
    %63 = vector.load %arg2[%c3_30, %c0_31] : memref<9x512xf32, #tpu.memory_space<vmem>>, vector<1x512xf32>
    %64 = vector.broadcast %63 : vector<1x512xf32> to vector<4x512xf32>
    %65 = arith.mulf %62, %64 : vector<4x512xf32>
    %66 = vector.broadcast %1 : vector<4x1xf32> to vector<4x512xf32>
    %67 = arith.mulf %66, %65 : vector<4x512xf32>
    %68 = arith.addf %54, %67 : vector<4x512xf32>
    %c3_32 = arith.constant 3 : index
    %c0_33 = arith.constant 0 : index
    %c0_34 = arith.constant 0 : index
    %69 = vector.load %arg3[%c3_32, %c0_33, %c0_34] : memref<9x4x4xf32, #tpu.memory_space<vmem>>, vector<1x4x4xf32>
    %70 = vector.shape_cast %69 : vector<1x4x4xf32> to vector<4x4xf32>
    %cst_35 = arith.constant dense<0.000000e+00> : vector<4x512xf32>
    %71 = tpu.matmul %70, %65, %cst_35 {dimension_numbers = #tpu.dot_dimension_numbers<[1], [0], [0], [1], [0, 0, 1, 1], [], []>} : vector<4x4xf32>, vector<4x512xf32>, vector<4x512xf32> -> vector<4x512xf32>
    %72 = arith.addf %68, %71 : vector<4x512xf32>
    %cst_36 = arith.constant 0.000000e+00 : f32
    %73 = vector.broadcast %cst_36 : f32 to vector<1x512xf32>
    %74 = arith.cmpf one, %63, %73 : vector<1x512xf32>
    %cst_37 = arith.constant -1.000000e+30 : f32
    %75 = vector.shape_cast %74 : vector<1x512xi1> to vector<1x512xi1>
    %76 = vector.broadcast %75 : vector<1x512xi1> to vector<4x512xi1>
    %77 = vector.broadcast %cst_37 : f32 to vector<4x512xf32>
    %78 = arith.select %76, %62, %77 : vector<4x512xi1>, vector<4x512xf32>
    %79 = arith.maximumf %61, %78 : vector<4x512xf32>
    %c4 = arith.constant 4 : index
    %c0_38 = arith.constant 0 : index
    %80 = vector.load %arg2[%c4, %c0_38] : memref<9x512xf32, #tpu.memory_space<vmem>>, vector<1x512xf32>
    %81 = vector.broadcast %80 : vector<1x512xf32> to vector<4x512xf32>
    %82 = arith.mulf %0, %81 : vector<4x512xf32>
    %83 = vector.broadcast %1 : vector<4x1xf32> to vector<4x512xf32>
    %84 = arith.mulf %83, %82 : vector<4x512xf32>
    %85 = arith.addf %72, %84 : vector<4x512xf32>
    %c4_39 = arith.constant 4 : index
    %c0_40 = arith.constant 0 : index
    %c0_41 = arith.constant 0 : index
    %86 = vector.load %arg3[%c4_39, %c0_40, %c0_41] : memref<9x4x4xf32, #tpu.memory_space<vmem>>, vector<1x4x4xf32>
    %87 = vector.shape_cast %86 : vector<1x4x4xf32> to vector<4x4xf32>
    %cst_42 = arith.constant dense<0.000000e+00> : vector<4x512xf32>
    %88 = tpu.matmul %87, %82, %cst_42 {dimension_numbers = #tpu.dot_dimension_numbers<[1], [0], [0], [1], [0, 0, 1, 1], [], []>} : vector<4x4xf32>, vector<4x512xf32>, vector<4x512xf32> -> vector<4x512xf32>
    %89 = arith.addf %85, %88 : vector<4x512xf32>
    %cst_43 = arith.constant 0.000000e+00 : f32
    %90 = vector.broadcast %cst_43 : f32 to vector<1x512xf32>
    %91 = arith.cmpf one, %80, %90 : vector<1x512xf32>
    %cst_44 = arith.constant -1.000000e+30 : f32
    %92 = vector.shape_cast %91 : vector<1x512xi1> to vector<1x512xi1>
    %93 = vector.broadcast %92 : vector<1x512xi1> to vector<4x512xi1>
    %94 = vector.broadcast %cst_44 : f32 to vector<4x512xf32>
    %95 = arith.select %93, %0, %94 : vector<4x512xi1>, vector<4x512xf32>
    %96 = arith.maximumf %79, %95 : vector<4x512xf32>
    %c511_i32 = arith.constant 511 : i32
    %97 = tpu.dynamic_rotate %0 by %c511_i32 dim 1 : vector<4x512xf32>, i32 -> vector<4x512xf32>
    %c5 = arith.constant 5 : index
    %c0_45 = arith.constant 0 : index
    %98 = vector.load %arg2[%c5, %c0_45] : memref<9x512xf32, #tpu.memory_space<vmem>>, vector<1x512xf32>
    %99 = vector.broadcast %98 : vector<1x512xf32> to vector<4x512xf32>
    %100 = arith.mulf %97, %99 : vector<4x512xf32>
    %101 = vector.broadcast %1 : vector<4x1xf32> to vector<4x512xf32>
    %102 = arith.mulf %101, %100 : vector<4x512xf32>
    %103 = arith.addf %89, %102 : vector<4x512xf32>
    %c5_46 = arith.constant 5 : index
    %c0_47 = arith.constant 0 : index
    %c0_48 = arith.constant 0 : index
    %104 = vector.load %arg3[%c5_46, %c0_47, %c0_48] : memref<9x4x4xf32, #tpu.memory_space<vmem>>, vector<1x4x4xf32>
    %105 = vector.shape_cast %104 : vector<1x4x4xf32> to vector<4x4xf32>
    %cst_49 = arith.constant dense<0.000000e+00> : vector<4x512xf32>
    %106 = tpu.matmul %105, %100, %cst_49 {dimension_numbers = #tpu.dot_dimension_numbers<[1], [0], [0], [1], [0, 0, 1, 1], [], []>} : vector<4x4xf32>, vector<4x512xf32>, vector<4x512xf32> -> vector<4x512xf32>
    %107 = arith.addf %103, %106 : vector<4x512xf32>
    %cst_50 = arith.constant 0.000000e+00 : f32
    %108 = vector.broadcast %cst_50 : f32 to vector<1x512xf32>
    %109 = arith.cmpf one, %98, %108 : vector<1x512xf32>
    %cst_51 = arith.constant -1.000000e+30 : f32
    %110 = vector.shape_cast %109 : vector<1x512xi1> to vector<1x512xi1>
    %111 = vector.broadcast %110 : vector<1x512xi1> to vector<4x512xi1>
    %112 = vector.broadcast %cst_51 : f32 to vector<4x512xf32>
    %113 = arith.select %111, %97, %112 : vector<4x512xi1>, vector<4x512xf32>
    %114 = arith.maximumf %96, %113 : vector<4x512xf32>
    %c497_i32 = arith.constant 497 : i32
    %115 = tpu.dynamic_rotate %0 by %c497_i32 dim 1 : vector<4x512xf32>, i32 -> vector<4x512xf32>
    %c6 = arith.constant 6 : index
    %c0_52 = arith.constant 0 : index
    %116 = vector.load %arg2[%c6, %c0_52] : memref<9x512xf32, #tpu.memory_space<vmem>>, vector<1x512xf32>
    %117 = vector.broadcast %116 : vector<1x512xf32> to vector<4x512xf32>
    %118 = arith.mulf %115, %117 : vector<4x512xf32>
    %119 = vector.broadcast %1 : vector<4x1xf32> to vector<4x512xf32>
    %120 = arith.mulf %119, %118 : vector<4x512xf32>
    %121 = arith.addf %107, %120 : vector<4x512xf32>
    %c6_53 = arith.constant 6 : index
    %c0_54 = arith.constant 0 : index
    %c0_55 = arith.constant 0 : index
    %122 = vector.load %arg3[%c6_53, %c0_54, %c0_55] : memref<9x4x4xf32, #tpu.memory_space<vmem>>, vector<1x4x4xf32>
    %123 = vector.shape_cast %122 : vector<1x4x4xf32> to vector<4x4xf32>
    %cst_56 = arith.constant dense<0.000000e+00> : vector<4x512xf32>
    %124 = tpu.matmul %123, %118, %cst_56 {dimension_numbers = #tpu.dot_dimension_numbers<[1], [0], [0], [1], [0, 0, 1, 1], [], []>} : vector<4x4xf32>, vector<4x512xf32>, vector<4x512xf32> -> vector<4x512xf32>
    %125 = arith.addf %121, %124 : vector<4x512xf32>
    %cst_57 = arith.constant 0.000000e+00 : f32
    %126 = vector.broadcast %cst_57 : f32 to vector<1x512xf32>
    %127 = arith.cmpf one, %116, %126 : vector<1x512xf32>
    %cst_58 = arith.constant -1.000000e+30 : f32
    %128 = vector.shape_cast %127 : vector<1x512xi1> to vector<1x512xi1>
    %129 = vector.broadcast %128 : vector<1x512xi1> to vector<4x512xi1>
    %130 = vector.broadcast %cst_58 : f32 to vector<4x512xf32>
    %131 = arith.select %129, %115, %130 : vector<4x512xi1>, vector<4x512xf32>
    %132 = arith.maximumf %114, %131 : vector<4x512xf32>
    %c496_i32 = arith.constant 496 : i32
    %133 = tpu.dynamic_rotate %0 by %c496_i32 dim 1 : vector<4x512xf32>, i32 -> vector<4x512xf32>
    %c7 = arith.constant 7 : index
    %c0_59 = arith.constant 0 : index
    %134 = vector.load %arg2[%c7, %c0_59] : memref<9x512xf32, #tpu.memory_space<vmem>>, vector<1x512xf32>
    %135 = vector.broadcast %134 : vector<1x512xf32> to vector<4x512xf32>
    %136 = arith.mulf %133, %135 : vector<4x512xf32>
    %137 = vector.broadcast %1 : vector<4x1xf32> to vector<4x512xf32>
    %138 = arith.mulf %137, %136 : vector<4x512xf32>
    %139 = arith.addf %125, %138 : vector<4x512xf32>
    %c7_60 = arith.constant 7 : index
    %c0_61 = arith.constant 0 : index
    %c0_62 = arith.constant 0 : index
    %140 = vector.load %arg3[%c7_60, %c0_61, %c0_62] : memref<9x4x4xf32, #tpu.memory_space<vmem>>, vector<1x4x4xf32>
    %141 = vector.shape_cast %140 : vector<1x4x4xf32> to vector<4x4xf32>
    %cst_63 = arith.constant dense<0.000000e+00> : vector<4x512xf32>
    %142 = tpu.matmul %141, %136, %cst_63 {dimension_numbers = #tpu.dot_dimension_numbers<[1], [0], [0], [1], [0, 0, 1, 1], [], []>} : vector<4x4xf32>, vector<4x512xf32>, vector<4x512xf32> -> vector<4x512xf32>
    %143 = arith.addf %139, %142 : vector<4x512xf32>
    %cst_64 = arith.constant 0.000000e+00 : f32
    %144 = vector.broadcast %cst_64 : f32 to vector<1x512xf32>
    %145 = arith.cmpf one, %134, %144 : vector<1x512xf32>
    %cst_65 = arith.constant -1.000000e+30 : f32
    %146 = vector.shape_cast %145 : vector<1x512xi1> to vector<1x512xi1>
    %147 = vector.broadcast %146 : vector<1x512xi1> to vector<4x512xi1>
    %148 = vector.broadcast %cst_65 : f32 to vector<4x512xf32>
    %149 = arith.select %147, %133, %148 : vector<4x512xi1>, vector<4x512xf32>
    %150 = arith.maximumf %132, %149 : vector<4x512xf32>
    %c495_i32 = arith.constant 495 : i32
    %151 = tpu.dynamic_rotate %0 by %c495_i32 dim 1 : vector<4x512xf32>, i32 -> vector<4x512xf32>
    %c8 = arith.constant 8 : index
    %c0_66 = arith.constant 0 : index
    %152 = vector.load %arg2[%c8, %c0_66] : memref<9x512xf32, #tpu.memory_space<vmem>>, vector<1x512xf32>
    %153 = vector.broadcast %152 : vector<1x512xf32> to vector<4x512xf32>
    %154 = arith.mulf %151, %153 : vector<4x512xf32>
    %155 = vector.broadcast %1 : vector<4x1xf32> to vector<4x512xf32>
    %156 = arith.mulf %155, %154 : vector<4x512xf32>
    %157 = arith.addf %143, %156 : vector<4x512xf32>
    %c8_67 = arith.constant 8 : index
    %c0_68 = arith.constant 0 : index
    %c0_69 = arith.constant 0 : index
    %158 = vector.load %arg3[%c8_67, %c0_68, %c0_69] : memref<9x4x4xf32, #tpu.memory_space<vmem>>, vector<1x4x4xf32>
    %159 = vector.shape_cast %158 : vector<1x4x4xf32> to vector<4x4xf32>
    %cst_70 = arith.constant dense<0.000000e+00> : vector<4x512xf32>
    %160 = tpu.matmul %159, %154, %cst_70 {dimension_numbers = #tpu.dot_dimension_numbers<[1], [0], [0], [1], [0, 0, 1, 1], [], []>} : vector<4x4xf32>, vector<4x512xf32>, vector<4x512xf32> -> vector<4x512xf32>
    %161 = arith.addf %157, %160 : vector<4x512xf32>
    %cst_71 = arith.constant 0.000000e+00 : f32
    %162 = vector.broadcast %cst_71 : f32 to vector<1x512xf32>
    %163 = arith.cmpf one, %152, %162 : vector<1x512xf32>
    %cst_72 = arith.constant -1.000000e+30 : f32
    %164 = vector.shape_cast %163 : vector<1x512xi1> to vector<1x512xi1>
    %165 = vector.broadcast %164 : vector<1x512xi1> to vector<4x512xi1>
    %166 = vector.broadcast %cst_72 : f32 to vector<4x512xf32>
    %167 = arith.select %165, %151, %166 : vector<4x512xi1>, vector<4x512xf32>
    %168 = arith.maximumf %150, %167 : vector<4x512xf32>
    %169 = vector.broadcast %2 : vector<4x1xf32> to vector<4x512xf32>
    %170 = arith.mulf %169, %168 : vector<4x512xf32>
    %171 = arith.addf %161, %170 : vector<4x512xf32>
    %172 = vector.broadcast %3 : vector<4x1xf32> to vector<4x512xf32>
    %173 = arith.addf %171, %172 : vector<4x512xf32>
    %c0_73 = arith.constant 0 : index
    %c0_74 = arith.constant 0 : index
    %174 = vector.load %arg5[%c0_73, %c0_74] : memref<4x512xf32, #tpu.memory_space<vmem>>, vector<4x512xf32>
    tpu.vector_store %arg5[%c0_73, %c0_74], %173 {strides = array<i32>} : memref<4x512xf32, #tpu.memory_space<vmem>>, vector<4x512xf32>,
    return
  }
  func.func @transform_0(%arg0: i32) -> (i32, i32) {
    %c0_i32 = arith.constant 0 : i32
    %c0_i32_0 = arith.constant 0 : i32
    return %c0_i32, %arg0 : i32, i32
  }
  func.func @transform_1(%arg0: i32) -> (i32, i32) {
    %c0_i32 = arith.constant 0 : i32
    %c0_i32_0 = arith.constant 0 : i32
    %c0_i32_1 = arith.constant 0 : i32
    return %c0_i32, %c0_i32_0 : i32, i32
  }
  func.func @transform_2(%arg0: i32) -> (i32, i32, i32) {
    %c0_i32 = arith.constant 0 : i32
    %c0_i32_0 = arith.constant 0 : i32
    %c0_i32_1 = arith.constant 0 : i32
    %c0_i32_2 = arith.constant 0 : i32
    return %c0_i32, %c0_i32_0, %c0_i32_1 : i32, i32, i32
  }
  func.func @transform_3(%arg0: i32) -> (i32, i32) {
    %c0_i32 = arith.constant 0 : i32
    %c0_i32_0 = arith.constant 0 : i32
    %c0_i32_1 = arith.constant 0 : i32
    return %c0_i32, %c0_i32_0 : i32, i32
  }
  func.func @transform_4(%arg0: i32) -> (i32, i32) {
    %c0_i32 = arith.constant 0 : i32
    %c0_i32_0 = arith.constant 0 : i32
    return %c0_i32, %arg0 : i32, i32
  }
}

module attributes {stable_mosaic.version = 11 : i64} {
  func.func @kernel(%arg0: i32, %arg1: memref<4x512xf32, #tpu.memory_space<vmem>>, %arg2: memref<9x512xf32, #tpu.memory_space<vmem>>, %arg3: memref<1x4x4xf32, #tpu.memory_space<vmem>>) attributes {dimension_semantics = [#tpu.dimension_semantics<parallel>], iteration_bounds = array<i64: 1>, scalar_prefetch = 0 : i64, scratch_operands = 0 : i64, tpu.core_type = #tpu.core_type<tc>, window_params = [{transform_indices = @transform_0, window_bounds = array<i64: 4, 512>}, {pipeline_mode = #tpu.pipeline_mode<synchronous>, transform_indices = @transform_1, window_bounds = array<i64: 9, 512>}, {transform_indices = @transform_2, window_bounds = array<i64: 1, 4, 4>}]} {
    %c0 = arith.constant 0 : index
    %c0_0 = arith.constant 0 : index
    %0 = vector.load %arg1[%c0, %c0_0] : memref<4x512xf32, #tpu.memory_space<vmem>>, vector<4x512xf32>
    %cst = arith.constant 0.000000e+00 : f32
    %1 = vector.broadcast %cst : f32 to vector<4x512xf32>
    %cst_1 = arith.constant -1.000000e+30 : f32
    %2 = vector.broadcast %cst_1 : f32 to vector<4x512xf32>
    %c17_i32 = arith.constant 17 : i32
    %3 = tpu.dynamic_rotate %0 by %c17_i32 dim 1 : vector<4x512xf32>, i32 -> vector<4x512xf32>
    %c0_2 = arith.constant 0 : index
    %c0_3 = arith.constant 0 : index
    %4 = vector.load %arg2[%c0_2, %c0_3] : memref<9x512xf32, #tpu.memory_space<vmem>>, vector<1x512xf32>
    %5 = vector.broadcast %4 : vector<1x512xf32> to vector<4x512xf32>
    %6 = arith.mulf %3, %5 : vector<4x512xf32>
    %7 = arith.addf %1, %6 : vector<4x512xf32>
    %cst_4 = arith.constant 0.000000e+00 : f32
    %8 = vector.broadcast %cst_4 : f32 to vector<1x512xf32>
    %9 = arith.cmpf one, %4, %8 : vector<1x512xf32>
    %cst_5 = arith.constant -1.000000e+30 : f32
    %10 = vector.shape_cast %9 : vector<1x512xi1> to vector<1x512xi1>
    %11 = vector.broadcast %10 : vector<1x512xi1> to vector<4x512xi1>
    %12 = vector.broadcast %cst_5 : f32 to vector<4x512xf32>
    %13 = arith.select %11, %3, %12 : vector<4x512xi1>, vector<4x512xf32>
    %14 = arith.maximumf %2, %13 : vector<4x512xf32>
    %c16_i32 = arith.constant 16 : i32
    %15 = tpu.dynamic_rotate %0 by %c16_i32 dim 1 : vector<4x512xf32>, i32 -> vector<4x512xf32>
    %c1 = arith.constant 1 : index
    %c0_6 = arith.constant 0 : index
    %16 = vector.load %arg2[%c1, %c0_6] : memref<9x512xf32, #tpu.memory_space<vmem>>, vector<1x512xf32>
    %17 = vector.broadcast %16 : vector<1x512xf32> to vector<4x512xf32>
    %18 = arith.mulf %15, %17 : vector<4x512xf32>
    %19 = arith.addf %7, %18 : vector<4x512xf32>
    %cst_7 = arith.constant 0.000000e+00 : f32
    %20 = vector.broadcast %cst_7 : f32 to vector<1x512xf32>
    %21 = arith.cmpf one, %16, %20 : vector<1x512xf32>
    %cst_8 = arith.constant -1.000000e+30 : f32
    %22 = vector.shape_cast %21 : vector<1x512xi1> to vector<1x512xi1>
    %23 = vector.broadcast %22 : vector<1x512xi1> to vector<4x512xi1>
    %24 = vector.broadcast %cst_8 : f32 to vector<4x512xf32>
    %25 = arith.select %23, %15, %24 : vector<4x512xi1>, vector<4x512xf32>
    %26 = arith.maximumf %14, %25 : vector<4x512xf32>
    %c15_i32 = arith.constant 15 : i32
    %27 = tpu.dynamic_rotate %0 by %c15_i32 dim 1 : vector<4x512xf32>, i32 -> vector<4x512xf32>
    %c2 = arith.constant 2 : index
    %c0_9 = arith.constant 0 : index
    %28 = vector.load %arg2[%c2, %c0_9] : memref<9x512xf32, #tpu.memory_space<vmem>>, vector<1x512xf32>
    %29 = vector.broadcast %28 : vector<1x512xf32> to vector<4x512xf32>
    %30 = arith.mulf %27, %29 : vector<4x512xf32>
    %31 = arith.addf %19, %30 : vector<4x512xf32>
    %cst_10 = arith.constant 0.000000e+00 : f32
    %32 = vector.broadcast %cst_10 : f32 to vector<1x512xf32>
    %33 = arith.cmpf one, %28, %32 : vector<1x512xf32>
    %cst_11 = arith.constant -1.000000e+30 : f32
    %34 = vector.shape_cast %33 : vector<1x512xi1> to vector<1x512xi1>
    %35 = vector.broadcast %34 : vector<1x512xi1> to vector<4x512xi1>
    %36 = vector.broadcast %cst_11 : f32 to vector<4x512xf32>
    %37 = arith.select %35, %27, %36 : vector<4x512xi1>, vector<4x512xf32>
    %38 = arith.maximumf %26, %37 : vector<4x512xf32>
    %c1_i32 = arith.constant 1 : i32
    %39 = tpu.dynamic_rotate %0 by %c1_i32 dim 1 : vector<4x512xf32>, i32 -> vector<4x512xf32>
    %c3 = arith.constant 3 : index
    %c0_12 = arith.constant 0 : index
    %40 = vector.load %arg2[%c3, %c0_12] : memref<9x512xf32, #tpu.memory_space<vmem>>, vector<1x512xf32>
    %41 = vector.broadcast %40 : vector<1x512xf32> to vector<4x512xf32>
    %42 = arith.mulf %39, %41 : vector<4x512xf32>
    %43 = arith.addf %31, %42 : vector<4x512xf32>
    %cst_13 = arith.constant 0.000000e+00 : f32
    %44 = vector.broadcast %cst_13 : f32 to vector<1x512xf32>
    %45 = arith.cmpf one, %40, %44 : vector<1x512xf32>
    %cst_14 = arith.constant -1.000000e+30 : f32
    %46 = vector.shape_cast %45 : vector<1x512xi1> to vector<1x512xi1>
    %47 = vector.broadcast %46 : vector<1x512xi1> to vector<4x512xi1>
    %48 = vector.broadcast %cst_14 : f32 to vector<4x512xf32>
    %49 = arith.select %47, %39, %48 : vector<4x512xi1>, vector<4x512xf32>
    %50 = arith.maximumf %38, %49 : vector<4x512xf32>
    %c4 = arith.constant 4 : index
    %c0_15 = arith.constant 0 : index
    %51 = vector.load %arg2[%c4, %c0_15] : memref<9x512xf32, #tpu.memory_space<vmem>>, vector<1x512xf32>
    %52 = vector.broadcast %51 : vector<1x512xf32> to vector<4x512xf32>
    %53 = arith.mulf %0, %52 : vector<4x512xf32>
    %54 = arith.addf %43, %53 : vector<4x512xf32>
    %cst_16 = arith.constant 0.000000e+00 : f32
    %55 = vector.broadcast %cst_16 : f32 to vector<1x512xf32>
    %56 = arith.cmpf one, %51, %55 : vector<1x512xf32>
    %cst_17 = arith.constant -1.000000e+30 : f32
    %57 = vector.shape_cast %56 : vector<1x512xi1> to vector<1x512xi1>
    %58 = vector.broadcast %57 : vector<1x512xi1> to vector<4x512xi1>
    %59 = vector.broadcast %cst_17 : f32 to vector<4x512xf32>
    %60 = arith.select %58, %0, %59 : vector<4x512xi1>, vector<4x512xf32>
    %61 = arith.maximumf %50, %60 : vector<4x512xf32>
    %c511_i32 = arith.constant 511 : i32
    %62 = tpu.dynamic_rotate %0 by %c511_i32 dim 1 : vector<4x512xf32>, i32 -> vector<4x512xf32>
    %c5 = arith.constant 5 : index
    %c0_18 = arith.constant 0 : index
    %63 = vector.load %arg2[%c5, %c0_18] : memref<9x512xf32, #tpu.memory_space<vmem>>, vector<1x512xf32>
    %64 = vector.broadcast %63 : vector<1x512xf32> to vector<4x512xf32>
    %65 = arith.mulf %62, %64 : vector<4x512xf32>
    %66 = arith.addf %54, %65 : vector<4x512xf32>
    %cst_19 = arith.constant 0.000000e+00 : f32
    %67 = vector.broadcast %cst_19 : f32 to vector<1x512xf32>
    %68 = arith.cmpf one, %63, %67 : vector<1x512xf32>
    %cst_20 = arith.constant -1.000000e+30 : f32
    %69 = vector.shape_cast %68 : vector<1x512xi1> to vector<1x512xi1>
    %70 = vector.broadcast %69 : vector<1x512xi1> to vector<4x512xi1>
    %71 = vector.broadcast %cst_20 : f32 to vector<4x512xf32>
    %72 = arith.select %70, %62, %71 : vector<4x512xi1>, vector<4x512xf32>
    %73 = arith.maximumf %61, %72 : vector<4x512xf32>
    %c497_i32 = arith.constant 497 : i32
    %74 = tpu.dynamic_rotate %0 by %c497_i32 dim 1 : vector<4x512xf32>, i32 -> vector<4x512xf32>
    %c6 = arith.constant 6 : index
    %c0_21 = arith.constant 0 : index
    %75 = vector.load %arg2[%c6, %c0_21] : memref<9x512xf32, #tpu.memory_space<vmem>>, vector<1x512xf32>
    %76 = vector.broadcast %75 : vector<1x512xf32> to vector<4x512xf32>
    %77 = arith.mulf %74, %76 : vector<4x512xf32>
    %78 = arith.addf %66, %77 : vector<4x512xf32>
    %cst_22 = arith.constant 0.000000e+00 : f32
    %79 = vector.broadcast %cst_22 : f32 to vector<1x512xf32>
    %80 = arith.cmpf one, %75, %79 : vector<1x512xf32>
    %cst_23 = arith.constant -1.000000e+30 : f32
    %81 = vector.shape_cast %80 : vector<1x512xi1> to vector<1x512xi1>
    %82 = vector.broadcast %81 : vector<1x512xi1> to vector<4x512xi1>
    %83 = vector.broadcast %cst_23 : f32 to vector<4x512xf32>
    %84 = arith.select %82, %74, %83 : vector<4x512xi1>, vector<4x512xf32>
    %85 = arith.maximumf %73, %84 : vector<4x512xf32>
    %c496_i32 = arith.constant 496 : i32
    %86 = tpu.dynamic_rotate %0 by %c496_i32 dim 1 : vector<4x512xf32>, i32 -> vector<4x512xf32>
    %c7 = arith.constant 7 : index
    %c0_24 = arith.constant 0 : index
    %87 = vector.load %arg2[%c7, %c0_24] : memref<9x512xf32, #tpu.memory_space<vmem>>, vector<1x512xf32>
    %88 = vector.broadcast %87 : vector<1x512xf32> to vector<4x512xf32>
    %89 = arith.mulf %86, %88 : vector<4x512xf32>
    %90 = arith.addf %78, %89 : vector<4x512xf32>
    %cst_25 = arith.constant 0.000000e+00 : f32
    %91 = vector.broadcast %cst_25 : f32 to vector<1x512xf32>
    %92 = arith.cmpf one, %87, %91 : vector<1x512xf32>
    %cst_26 = arith.constant -1.000000e+30 : f32
    %93 = vector.shape_cast %92 : vector<1x512xi1> to vector<1x512xi1>
    %94 = vector.broadcast %93 : vector<1x512xi1> to vector<4x512xi1>
    %95 = vector.broadcast %cst_26 : f32 to vector<4x512xf32>
    %96 = arith.select %94, %86, %95 : vector<4x512xi1>, vector<4x512xf32>
    %97 = arith.maximumf %85, %96 : vector<4x512xf32>
    %c495_i32 = arith.constant 495 : i32
    %98 = tpu.dynamic_rotate %0 by %c495_i32 dim 1 : vector<4x512xf32>, i32 -> vector<4x512xf32>
    %c8 = arith.constant 8 : index
    %c0_27 = arith.constant 0 : index
    %99 = vector.load %arg2[%c8, %c0_27] : memref<9x512xf32, #tpu.memory_space<vmem>>, vector<1x512xf32>
    %100 = vector.broadcast %99 : vector<1x512xf32> to vector<4x512xf32>
    %101 = arith.mulf %98, %100 : vector<4x512xf32>
    %102 = arith.addf %90, %101 : vector<4x512xf32>
    %cst_28 = arith.constant 0.000000e+00 : f32
    %103 = vector.broadcast %cst_28 : f32 to vector<1x512xf32>
    %104 = arith.cmpf one, %99, %103 : vector<1x512xf32>
    %cst_29 = arith.constant -1.000000e+30 : f32
    %105 = vector.shape_cast %104 : vector<1x512xi1> to vector<1x512xi1>
    %106 = vector.broadcast %105 : vector<1x512xi1> to vector<4x512xi1>
    %107 = vector.broadcast %cst_29 : f32 to vector<4x512xf32>
    %108 = arith.select %106, %98, %107 : vector<4x512xi1>, vector<4x512xf32>
    %109 = arith.maximumf %97, %108 : vector<4x512xf32>
    %c4_30 = arith.constant 4 : index
    %c0_31 = arith.constant 0 : index
    %110 = vector.load %arg2[%c4_30, %c0_31] : memref<9x512xf32, #tpu.memory_space<vmem>>, vector<1x512xf32>
    %cst_32 = arith.constant 0.000000e+00 : f32
    %111 = vector.broadcast %cst_32 : f32 to vector<1x512xf32>
    %112 = arith.cmpf one, %110, %111 : vector<1x512xf32>
    %cst_33 = arith.constant 0.000000e+00 : f32
    %113 = vector.shape_cast %112 : vector<1x512xi1> to vector<1x512xi1>
    %114 = vector.broadcast %113 : vector<1x512xi1> to vector<4x512xi1>
    %115 = vector.broadcast %cst_33 : f32 to vector<4x512xf32>
    %116 = arith.select %114, %109, %115 : vector<4x512xi1>, vector<4x512xf32>
    %cst_34 = arith.constant dense<0.000000e+00> : vector<4xf32>
    %117 = vector.multi_reduction <add>, %102, %cst_34 [1] : vector<4x512xf32> to vector<4xf32>
    %118 = vector.shape_cast %117 : vector<4xf32> to vector<4x1xf32>
    %119 = arith.mulf %102, %102 : vector<4x512xf32>
    %cst_35 = arith.constant dense<0.000000e+00> : vector<4xf32>
    %120 = vector.multi_reduction <add>, %119, %cst_35 [1] : vector<4x512xf32> to vector<4xf32>
    %121 = vector.shape_cast %120 : vector<4xf32> to vector<4x1xf32>
    %cst_36 = arith.constant dense<0.000000e+00> : vector<4xf32>
    %122 = vector.multi_reduction <add>, %116, %cst_36 [1] : vector<4x512xf32> to vector<4xf32>
    %123 = vector.shape_cast %122 : vector<4xf32> to vector<4x1xf32>
    %124 = arith.mulf %116, %116 : vector<4x512xf32>
    %cst_37 = arith.constant dense<0.000000e+00> : vector<4xf32>
    %125 = vector.multi_reduction <add>, %124, %cst_37 [1] : vector<4x512xf32> to vector<4xf32>
    %126 = vector.shape_cast %125 : vector<4xf32> to vector<4x1xf32>
    %127 = tpu.concatenate %118, %121, %123, %126 in 1 : vector<4x1xf32>, vector<4x1xf32>, vector<4x1xf32>, vector<4x1xf32> -> vector<4x4xf32>
    %c0_38 = arith.constant 0 : index
    %c0_39 = arith.constant 0 : index
    %c0_40 = arith.constant 0 : index
    %128 = vector.load %arg3[%c0_38, %c0_39, %c0_40] : memref<1x4x4xf32, #tpu.memory_space<vmem>>, vector<1x4x4xf32>
    %129 = vector.shape_cast %128 : vector<1x4x4xf32> to vector<4x4xf32>
    %130 = vector.shape_cast %127 : vector<4x4xf32> to vector<1x4x4xf32>
    tpu.vector_store %arg3[%c0_38, %c0_39, %c0_40], %130 {strides = array<i32>} : memref<1x4x4xf32, #tpu.memory_space<vmem>>, vector<1x4x4xf32>,
    return
  }
  func.func @transform_0(%arg0: i32) -> (i32, i32) {
    %c0_i32 = arith.constant 0 : i32
    %c0_i32_0 = arith.constant 0 : i32
    return %c0_i32, %arg0 : i32, i32
  }
  func.func @transform_1(%arg0: i32) -> (i32, i32) {
    %c0_i32 = arith.constant 0 : i32
    %c0_i32_0 = arith.constant 0 : i32
    %c0_i32_1 = arith.constant 0 : i32
    return %c0_i32, %c0_i32_0 : i32, i32
  }
  func.func @transform_2(%arg0: i32) -> (i32, i32, i32) {
    %c0_i32 = arith.constant 0 : i32
    %c0_i32_0 = arith.constant 0 : i32
    %c0_i32_1 = arith.constant 0 : i32
    return %arg0, %c0_i32, %c0_i32_0 : i32, i32, i32
  }
}

</mosaic_0001>

<bundles_post_ra>
// kernel: mixed_op.2
= control target key start
LH: loop header
LB: loop body
LE: loop exit
PB: predicated region body
PF: predicated region fallthrough
CT: control target
= control target key end

     0   :  { %s757_s13 = smov 16   ;;  %s758_s14 = smov 17   ;;  %v27_v4 = vlaneseq  ;;  %v765_v10 = vmov 0   ;;  %v1674_v50 = vmov 0  ;;  %s1645_s0 = inlined_call_operand.vmem [shape: f32[4,512], index: 0, kind: input, shape index: {}]   ;;  %s1646_s1 = inlined_call_operand.vmem [shape: f32[9,512], index: 1, kind: input, shape index: {}]   ;;  %s1647_s2 = inlined_call_operand.vmem [shape: f32[1,4,4], index: 2, kind: output, shape index: {}]  }
   0x1   :  { %v784_v0 = vld [vmem:[%s1645_s0] sm:$0xff]  ;;  %v789_v1 = vld [vmem:[%s1645_s0 + $0x8] sm:$0xff]  ;;  %s759_s0 = smov 15   ;;  %s760_s15 = smov 1  }
   0x2   :  { %1665 = vst [vmem:[#allocation2_spill] sm:$0xff] %v789_v1  ;;  %94 = vrot.lane.b32.xlu1 %v784_v0, %s757_s13  ;;  %19 = vrot.lane.b32.xlu0 %v784_v0, %s758_s14  ;;  %v795_v2 = vcombine.high %v789_v1, %v789_v1  ;;  %v799_v3 = vcombine.high %v784_v0, %v784_v0  ;;  %s761_s16 = smov 127   ;;  %s762_s17 = smov 113   ;;  %v834_v5 = vld [vmem:[%s1646_s1] ss:$8 sm:$0xf] }
   0x3   :  { %s763_s18 = smov 112   ;;  %s764_s19 = smov 111   ;;  %v37_v6 = vshrl.u32 %v27_v4, 7  ;;  %v839_v7 = vld [vmem:[%s1646_s1 + $0x1] ss:$8 sm:$0xf] }
   0x4   :  { %1666 = vst [vmem:[#allocation3_spill] sm:$0xff] %v795_v2  ;;  %vm64_vm0 = vcmp.ne.f32.partialorder %v834_v5, 0.0  ;;  %vm138_vm1 = vcmp.ne.f32.partialorder %v839_v7, 0.0  ;;  %v853_v12 = vld [vmem:[%s1646_s1 + $0x2] ss:$8 sm:$0xf] }
   0x5   :  { %v843_v8 = vsub.s32 0, %v37_v6  ;;  %v845_v9 = vsub.s32 1, %v37_v6  ;;  %v848_v11 = vsel %vm64_vm0, 1, %v765_v10  ;;  %v856_v13 = vsel %vm138_vm1, 1, %v765_v10 }
   0x6   :  { %25 = vrot.lane.b32.xlu1 %v795_v2, %s758_s14  ;;  %21 = vrot.lane.b32.xlu0 %v799_v3, %s758_s14  ;;  %v858_v14 = vsub.s32 2, %v37_v6  ;;  %v860_v15 = vsub.s32 3, %v37_v6  ;;  %v862_v16 = vand.u32 127, %v27_v4  ;;  %vm212_vm2 = vcmp.ne.f32.partialorder %v853_v12, 0.0 }
   0x7   :  { %v39_v17 = vrot.slane %v834_v5, %v843_v8  ;;  %v69_v18 = vrot.slane %v848_v11, %v843_v8  ;;  %v741_v20 = vld [vmem:[%s1646_s1 + $0x4] ss:$8 sm:$0xf]  ;;  %v73_v23 = vrot.slane %v848_v11, %v845_v9  ;;  %v113_v24 = vrot.slane %v839_v7, %v843_v8  ;;  %v889_v27 = vld [vmem:[%s1646_s1 + $0x3] ss:$8 sm:$0xf] }
   0x8   :  { %v143_v25 = vrot.slane %v856_v13, %v843_v8  ;;  %v147_v28 = vrot.slane %v856_v13, %v845_v9  ;;  %v151_v31 = vrot.slane %v856_v13, %v858_v14  ;;  %v155_v32 = vrot.slane %v856_v13, %v860_v15  ;;  %v922_v42 = vld [vmem:[%s1646_s1 + $0x5] ss:$8 sm:$0xf]  ;;  %v961_v62 = vld [vmem:[%s1646_s1 + $0x6] ss:$8 sm:$0xf] }
   0x9   :  { %v904_v34 = vsel %vm212_vm2, 1, %v765_v10  ;;  %vm351_vm3 = vcmp.ne.f32.partialorder %v741_v20, 0.0  ;;  %vm286_vm4 = vcmp.ne.f32.partialorder %v889_v27, 0.0  ;;  %v322_v36 = vrot.slane %v741_v20, %v843_v8  ;;  %1667 = vst [vmem:[#allocation4_spill] sm:$0xff] %v961_v62 }
   0xa   :  { %100 = vrot.lane.b32.xlu1 %v795_v2, %s757_s13  ;;  %96 = vrot.lane.b32.xlu0 %v799_v3, %s757_s13  ;;  %v326_v37 = vrot.slane %v741_v20, %v845_v9  ;;  %v77_v40 = vrot.slane %v848_v11, %v858_v14  ;;  %v81_v41 = vrot.slane %v848_v11, %v860_v15  ;;  %v352_v48 = vsel %vm351_vm3, 1, %v765_v10  ;;  %v995_v47 = vld [vmem:[%s1646_s1 + $0x7] ss:$8 sm:$0xf] }
   0xb   :  { %v330_v43 = vrot.slane %v741_v20, %v858_v14  ;;  %v334_v44 = vrot.slane %v741_v20, %v860_v15  ;;  %v221_v46 = vrot.slane %v904_v34, %v845_v9  ;;  %v225_v49 = vrot.slane %v904_v34, %v858_v14  ;;  %1672 = vst [vmem:[#allocation5_spill] sm:$0xff] %v995_v47 }
   0xc   :  { %v940_v51 = vsel %vm286_vm4, 1, %v765_v10  ;;  %v356_v52 = vrot.slane %v352_v48, %v843_v8  ;;  %v217_v54 = vrot.slane %v904_v34, %v843_v8  ;;  %v335_v55 = vcombine.low %v322_v36, %v326_v37 }
   0xd   :  { %vm425_vm5 = vcmp.ne.f32.partialorder %v922_v42, 0.0  ;;  %vm1648_vm6 = vcmp.lt.s32.totalorder %v862_v16, 17  ;;  %v229_v58 = vrot.slane %v904_v34, %v860_v15  ;;  %v336_v60 = vcombine.low %v330_v43, %v334_v44 }
   0xe   :  { %98 = vrot.lane.b32.xlu1 %v789_v1, %s757_s13  ;;  %23 = vrot.lane.b32.xlu0 %v789_v1, %s758_s14  ;;  %v368_v61 = vrot.slane %v352_v48, %v860_v15  ;;  %v360_v20 = vrot.slane %v352_v48, %v845_v9  ;;  %vm972_vm7 = vcmp.eq.s32.totalorder %v356_v52, 1  ;;  %v977_v43 = vsel %vm425_vm5, 1, %v765_v10 }
   0xf   :  { %v364_v44 = vrot.slane %v352_v48, %v858_v14  ;;  %vm980_vm8 = vcmp.eq.s32.totalorder %v69_v18, 1  ;;  %v989_v52 = vmul.f32 %v335_v55, %v784_v0  ;;  %vm499_vm9 = vcmp.ne.f32.partialorder %v961_v62, 0.0 }
  0x10   :  { %v1007_v36 = vmul.f32 %v336_v60, %v789_v1  ;;  %vm1009_vm11 = vcmp.eq.s32.totalorder %v368_v61, 1  ;;  %vm1016_vm12 = vcmp.eq.s32.totalorder %v73_v23, 1  ;;  %vm1027_vm13 = vcmp.eq.s32.totalorder %v360_v20, 1 }
  0x11   :  { %v1675_v50 = vsel %vm1009_vm11, 4294967295, %v1674_v50  ;;  %vm1033_vm14 = vcmp.eq.s32.totalorder %v364_v44, 1  ;;  %v1681_v23 = vmov 0  ;;  %v1040_v35 = vsel %vm499_vm9, 1, %v765_v10 }
  0x12   :  { %170 = vrot.lane.b32.xlu1 %v799_v3, %s759_s0  ;;  %168 = vrot.lane.b32.xlu0 %v784_v0, %s759_s0  ;;  %1673 = vst [vmem:[#allocation6_spill] sm:$0xff] %v1007_v36  ;;  %1676 = vst [vmem:[#allocation7_spill] sm:$0xff] %v1675_v50  ;;  %v1682_v23 = vsel %vm1033_vm14, 4294967295, %v1681_v23  ;;  %vm573_vm15 = vcmp.ne.f32.partialorder %v995_v47, 0.0  ;;  %vm1043_vm0 = vcmp.eq.s32.totalorder %v77_v40, 1  ;;  %vm1047_vm1 = vcmp.eq.s32.totalorder %v81_v41, 1 }
  0x13   :  { %1683 = vst [vmem:[#allocation8_spill] sm:$0xff] %v1682_v23  ;;  %v1063_v41 = vld [vmem:[%s1646_s1 + $0x20] ss:$8 sm:$0xf]  ;;  %vm1068_vm2 = vcmp.eq.s32.totalorder %v143_v25, 1  ;;  %vm1075_vm3 = vcmp.eq.s32.totalorder %v147_v28, 1  ;;  %v1711_v34 = vrot.slane %v940_v51, %v845_v9  ;;  %v1717_v60 = vrot.slane %v834_v5, %v845_v9 }
  0x14   :  { %v1103_v33 = vsel %vm573_vm15, 1, %v765_v10  ;;  %vm647_vm5 = vcmp.ne.f32.partialorder %v1063_v41, 0.0  ;;  %vm1125_vm9 = vcmp.eq.s32.totalorder %v151_v31, 1  ;;  %vm1132_vm15 = vcmp.eq.s32.totalorder %v155_v32, 1 }
  0x15   :  { %vm1139_vm4 = vcmp.eq.s32.totalorder %v221_v46, 1  ;;  %v1166_v13 = vsel %vm647_vm5, 1, %v765_v10  ;;  %vm1700_vm5 = vcmp.lt.s32.totalorder %v862_v16, 17  ;;  %v1718_v47 = vrot.slane %v940_v51, %v858_v14 }
  0x16   :  { %172 = vrot.lane.b32.xlu1 %v789_v1, %s759_s0  ;;  %174 = vrot.lane.b32.xlu0 %v795_v2, %s759_s0  ;;  %vm1701_vm10 = vmmov %vm1700_vm5  ;;  %v1723_v4 = vrot.slane %v834_v5, %v858_v14  ;;  %vm1730_vm11 = vcmp.lt.s32.totalorder %v862_v16, 1  ;;  %v1733_v6 = vrot.slane %v853_v12, %v843_v8 }
  0x1a   :  { %244 = vrot.lane.b32.xlu1 %v799_v3, %s760_s15  ;;  %242 = vrot.lane.b32.xlu0 %v784_v0, %s760_s15 }
  0x1e   :  { %246 = vrot.lane.b32.xlu1 %v789_v1, %s760_s15  ;;  %248 = vrot.lane.b32.xlu0 %v795_v2, %s760_s15 }
  0x22   :  { %383 = vrot.lane.b32.xlu1 %v799_v3, %s761_s16  ;;  %381 = vrot.lane.b32.xlu0 %v784_v0, %s761_s16 }
  0x26   :  { %387 = vrot.lane.b32.xlu1 %v795_v2, %s761_s16  ;;  %385 = vrot.lane.b32.xlu0 %v789_v1, %s761_s16 }
  0x2a   :  { %457 = vrot.lane.b32.xlu1 %v799_v3, %s762_s17  ;;  %455 = vrot.lane.b32.xlu0 %v784_v0, %s762_s17 }
  0x2e   :  { %461 = vrot.lane.b32.xlu1 %v795_v2, %s762_s17  ;;  %459 = vrot.lane.b32.xlu0 %v789_v1, %s762_s17 }
  0x32   :  { %531 = vrot.lane.b32.xlu1 %v799_v3, %s763_s18  ;;  %529 = vrot.lane.b32.xlu0 %v784_v0, %s763_s18 }
  0x36   :  { %535 = vrot.lane.b32.xlu1 %v795_v2, %s763_s18  ;;  %533 = vrot.lane.b32.xlu0 %v789_v1, %s763_s18 }
  0x3a   :  { %605 = vrot.lane.b32.xlu1 %v799_v3, %s764_s19  ;;  %603 = vrot.lane.b32.xlu0 %v784_v0, %s764_s19 }
  0x3e   :  { %609 = vrot.lane.b32.xlu1 %v795_v2, %s764_s19  ;;  %607 = vrot.lane.b32.xlu0 %v789_v1, %s764_s19 }
  0x74   :  { %v874_v21 = vpop.permute.xlu1 %94  ;;  %v876_v22 = vpop.permute.xlu0 %19 }
  0x78   :  { %v911_v38 = vpop.permute.xlu1 %25  ;;  %v913_v39 = vpop.permute.xlu0 %21 }
  0x79   :  { %v33_v29 = vsel %vm1648_vm6, %v911_v38, %v876_v22  ;;  %v32_v46 = vsel %vm1648_vm6, %v876_v22, %v913_v39  ;;  %vm1698_vm6 = vcmp.lt.s32.totalorder %v862_v16, 16 }
  0x7a   :  { %v86_v32 = vsel %vm980_vm8, %v33_v29, -1e+30  ;;  %vm1699_vm8 = vmmov %vm1698_vm6  ;;  %v87_v22 = vsel %vm1016_vm12, %v32_v46, -1e+30  ;;  %v56_v45 = vmul.f32 %v39_v17, %v33_v29 }
  0x7b   :  { %vm1705_vm12 = vmmov %vm1699_vm8  ;;  %v91_v20 = vmax.f32 %v87_v22, -1e+30 }
  0x7c   :  { %v949_v56 = vpop.permute.xlu1 %100  ;;  %v951_v57 = vpop.permute.xlu0 %96 }
  0x7d   :  { %v106_v10 = vsel %vm1698_vm6, %v949_v56, %v874_v21  ;;  %v105_v59 = vsel %vm1699_vm8, %v874_v21, %v951_v57  ;;  %vm1198_vm6 = vcmp.eq.s32.totalorder %v217_v54, 1 }
  0x7e   :  { %v130_v29 = vmul.f32 %v113_v24, %v106_v10  ;;  %v1714_v24 = vrot.slane %v940_v51, %v843_v8  ;;  %v160_v26 = vsel %vm1068_vm2, %v106_v10, -1e+30 }
  0x80   :  { %v998_v18 = vpop.permute.xlu1 %98  ;;  %v1000_v48 = vpop.permute.xlu0 %23  ;;  %v134_v1 = vadd.f32 %v130_v29, %v56_v45 }
  0x81   :  { %v30_v19 = vsel %vm1700_vm5, %v1000_v48, %v911_v38  ;;  %v31_v53 = vsel %vm1701_vm10, %v913_v39, %v1000_v48  ;;  %v90_v48 = vmax.f32 %v86_v32, -1e+30  ;;  %vm1704_vm10 = vmmov %vm1699_vm8  ;;  %v104_v38 = vsel %vm1705_vm12, %v951_v57, %v998_v18 }
  0x82   :  { %v103_v54 = vsel %vm1704_vm10, %v998_v18, %v949_v56  ;;  %vm1222_vm8 = vcmp.eq.s32.totalorder %v225_v49, 1  ;;  %vm1229_vm5 = vcmp.eq.s32.totalorder %v229_v58, 1  ;;  %v1710_v56 = vrot.slane %v839_v7, %v845_v9 }
  0x83   :  { %v88_v49 = vsel %vm1043_vm0, %v31_v53, -1e+30  ;;  %v89_v18 = vsel %vm1047_vm1, %v30_v19, -1e+30  ;;  %vm1246_vm10 = vcmp.eq.s32.totalorder %v1711_v34, 1  ;;  %vm1253_vm12 = vcmp.eq.s32.totalorder %v1714_v24, 1 }
  0x84   :  { %v1079_v40 = vpop.permute.xlu1 %170  ;;  %v1081_v55 = vpop.permute.xlu0 %168  ;;  %v131_v57 = vmul.f32 %v1710_v56, %v105_v59  ;;  %v57_v56 = vmul.f32 %v1717_v60, %v32_v46  ;;  %v161_v34 = vsel %vm1075_vm3, %v105_v59, -1e+30  ;;  %vm1267_vm0 = vcmp.eq.s32.totalorder %v1718_v47, 1 }
  0x85   :  { %v1721_v24 = vrot.slane %v839_v7, %v858_v14  ;;  %v1722_v46 = vrot.slane %v839_v7, %v860_v15  ;;  %v58_v44 = vmul.f32 %v1723_v4, %v31_v53  ;;  %vm1724_vm1 = vcmp.lt.s32.totalorder %v862_v16, 15 }
  0x86   :  { %v179_v47 = vsel %vm1724_vm1, %v1081_v55, %v1079_v40  ;;  %v1725_v59 = vrot.slane %v940_v51, %v860_v15  ;;  %v1728_v7 = vrot.slane %v834_v5, %v860_v15  ;;  %v92_v50 = vmax.f32 %v88_v49, -1e+30  ;;  %vm1729_vm3 = vmmov %vm1724_vm1 }
  0x87   :  { %v132_v2 = vmul.f32 %v1721_v24, %v104_v38  ;;  %v133_v22 = vmul.f32 %v1722_v46, %v103_v54  ;;  %v93_v53 = vmax.f32 %v89_v18, -1e+30  ;;  %vm389_vm1 = vcmp.lt.s32.totalorder %v862_v16, 127 }
  0x88   :  { %v1143_v11 = vpop.permute.xlu1 %172  ;;  %v1145_v31 = vpop.permute.xlu0 %174  ;;  %vm1287_vm2 = vcmp.eq.s32.totalorder %v1725_v59, 1  ;;  %v59_v46 = vmul.f32 %v1728_v7, %v30_v19  ;;  %v164_v51 = vmax.f32 %v90_v48, %v160_v26  ;;  %v135_v59 = vadd.f32 %v131_v57, %v57_v56 }
  0x89   :  { %v180_v4 = vsel %vm1729_vm3, %v1145_v31, %v1081_v55  ;;  %v165_v23 = vmax.f32 %v91_v20, %v161_v34  ;;  %v162_v36 = vsel %vm1125_vm9, %v104_v38, -1e+30  ;;  %v163_v5 = vsel %vm1132_vm15, %v103_v54, -1e+30  ;;  %vm1732_vm9 = vmmov %vm1729_vm3 }
  0x8a   :  { %v235_v19 = vsel %vm1139_vm4, %v179_v47, -1e+30  ;;  %v1731_v55 = vrot.slane %v853_v12, %v845_v9  ;;  %v178_v26 = vsel %vm1729_vm3, %v1079_v40, %v1143_v11  ;;  %v177_v30 = vsel %vm1732_vm9, %v1143_v11, %v1145_v31  ;;  %vm1734_vm4 = vmmov %vm1730_vm11 }
  0x8b   :  { %v204_v25 = vmul.f32 %v1733_v6, %v180_v4  ;;  %v136_v48 = vadd.f32 %v132_v2, %v58_v44  ;;  %v137_v54 = vadd.f32 %v133_v22, %v59_v46  ;;  %v166_v29 = vmax.f32 %v92_v50, %v162_v36  ;;  %vm1741_vm3 = vmmov %vm1734_vm4 }
  0x8c   :  { %v245_v21 = vpop.permute.xlu1 %244  ;;  %v243_v63 = vpop.permute.xlu0 %242  ;;  %v205_v18 = vmul.f32 %v1731_v55, %v179_v47  ;;  %v167_v57 = vmax.f32 %v93_v53, %v163_v5  ;;  %v239_v56 = vmax.f32 %v165_v23, %v235_v19  ;;  %v1735_v11 = vrot.slane %v889_v27, %v843_v8 }
  0x8d   :  { %v253_v20 = vsel %vm1730_vm11, %v243_v63, %v245_v21  ;;  %v1736_v34 = vrot.slane %v977_v43, %v843_v8  ;;  %v1739_v2 = vrot.slane %v853_v12, %v858_v14  ;;  %v234_v23 = vsel %vm1198_vm6, %v180_v4, -1e+30 }
  0x8e   :  { %vm1663_vm9 = vcmp.lt.s32.totalorder %v862_v16, 113  ;;  %v209_v44 = vadd.f32 %v205_v18, %v135_v59  ;;  %v208_v7 = vadd.f32 %v204_v25, %v134_v1  ;;  %v237_v46 = vsel %vm1229_vm5, %v177_v30, -1e+30 }
  0x8f   :  { %vm1331_vm15 = vcmp.eq.s32.totalorder %v1736_v34, 1  ;;  %v206_v50 = vmul.f32 %v1739_v2, %v178_v26  ;;  %v309_v39 = vsel %vm1246_vm10, %v253_v20, -1e+30  ;;  %v1746_v1 = vrot.slane %v889_v27, %v860_v15 }
  0x90   :  { %v247_v10 = vpop.permute.xlu1 %246  ;;  %v249_v24 = vpop.permute.xlu0 %248  ;;  %v1747_v5 = vrot.slane %v977_v43, %v845_v9  ;;  %v238_v55 = vmax.f32 %v164_v51, %v234_v23  ;;  %v1750_v18 = vrot.slane %v889_v27, %v858_v14  ;;  %v1751_v32 = vrot.slane %v977_v43, %v858_v14 }
  0x91   :  { %v254_v49 = vsel %vm1730_vm11, %v249_v24, %v243_v63  ;;  %v251_v40 = vsel %vm1734_vm4, %v247_v10, %v249_v24  ;;  %v1740_v63 = vrot.slane %v853_v12, %v860_v15  ;;  %v252_v22 = vsel %vm1741_vm3, %v245_v21, %v247_v10 }
  0x92   :  { %v278_v31 = vmul.f32 %v1735_v11, %v254_v49  ;;  %v236_v24 = vsel %vm1222_vm8, %v178_v26, -1e+30  ;;  %v1742_v12 = vrot.slane %v977_v43, %v860_v15  ;;  %v1745_v21 = vrot.slane %v889_v27, %v845_v9 }
  0x93   :  { %v207_v36 = vmul.f32 %v1740_v63, %v177_v30  ;;  %v281_v17 = vmul.f32 %v1746_v1, %v251_v40  ;;  %v308_v59 = vsel %vm1253_vm12, %v254_v49, -1e+30  ;;  %vm1370_vm6 = vcmp.eq.s32.totalorder %v1747_v5, 1 }
  0x94   :  { %v384_v38 = vpop.permute.xlu1 %383  ;;  %v382_v45 = vpop.permute.xlu0 %381  ;;  %vm1353_vm11 = vcmp.eq.s32.totalorder %v1742_v12, 1  ;;  %v279_v10 = vmul.f32 %v1745_v21, %v253_v20  ;;  %v280_v58 = vmul.f32 %v1750_v18, %v252_v22  ;;  %v310_v26 = vsel %vm1267_vm0, %v252_v22, -1e+30 }
  0x95   :  { %v282_v30 = vadd.f32 %v278_v31, %v208_v7  ;;  %vm1382_vm8 = vcmp.eq.s32.totalorder %v1751_v32, 1  ;;  %v1754_v6 = vrot.slane %v1040_v35, %v843_v8  ;;  %v210_v27 = vadd.f32 %v206_v50, %v136_v48  ;;  %v1775_v32 = vld [vmem:[#allocation8_spill] sm:$0xff] }
  0x96   :  { %v240_v25 = vmax.f32 %v166_v29, %v236_v24  ;;  %v211_v20 = vadd.f32 %v207_v36, %v137_v54  ;;  %v311_v62 = vsel %vm1287_vm2, %v251_v40, -1e+30  ;;  %v241_v11 = vmax.f32 %v167_v57, %v237_v46 }
  0x97   :  { %vm1389_vm5 = vcmp.eq.s32.totalorder %v1754_v6, 1  ;;  %v313_v31 = vmax.f32 %v239_v56, %v309_v39  ;;  %v312_v43 = vmax.f32 %v238_v55, %v308_v59  ;;  %v392_v34 = vsel %vm389_vm1, %v382_v45, %v384_v38  ;;  %v1776_v6 = vld [vmem:[#allocation2_spill] sm:$0xff] }
  0x98   :  { %v388_v28 = vpop.permute.xlu1 %387  ;;  %v386_v4 = vpop.permute.xlu0 %385  ;;  %v1757_v23 = vrot.slane %v1040_v35, %v860_v15  ;;  %v283_v48 = vadd.f32 %v279_v10, %v209_v44  ;;  %v314_v60 = vmax.f32 %v240_v25, %v310_v26  ;;  %v285_v54 = vadd.f32 %v281_v17, %v211_v20 }
  0x99   :  { %v660_v29 = vrot.slane %v1166_v13, %v858_v14  ;;  %v284_v57 = vadd.f32 %v280_v58, %v210_v27  ;;  %v315_v56 = vmax.f32 %v241_v11, %v311_v62  ;;  %v347_v40 = vadd.f32 %v989_v52, %v282_v30 }
  0x9a   :  { %vm1400_vm10 = vcmp.eq.s32.totalorder %v1757_v23, 1  ;;  %v634_v50 = vrot.slane %v1063_v41, %v860_v15  ;;  %v1760_v36 = vrot.slane %v922_v42, %v843_v8  ;;  %v393_v7 = vsel %vm389_vm1, %v388_v28, %v382_v45 }
  0x9b   :  { %v390_v44 = vsel %vm389_vm1, %v386_v4, %v388_v28  ;;  %v391_v46 = vsel %vm389_vm1, %v384_v38, %v386_v4  ;;  %v1761_v12 = vrot.slane %v1040_v35, %v845_v9  ;;  %v1764_v10 = vrot.slane %v1103_v33, %v843_v8 }
  0x9c   :  { %v458_v2 = vpop.permute.xlu1 %457  ;;  %v456_v63 = vpop.permute.xlu0 %455  ;;  %v417_v24 = vmul.f32 %v1760_v36, %v392_v34  ;;  %v1767_v45 = vsel %vm972_vm7, %v784_v0, -1e+30  ;;  %v1768_v38 = vsel %vm1027_vm13, %v799_v3, -1e+30  ;;  %v1769_v17 = vrot.slane %v1040_v35, %v858_v14  ;;  %v1772_v3 = vld [vmem:[#allocation6_spill] sm:$0xff]  ;;  %v1787_v36 = vld [vmem:[#allocation7_spill] sm:$0xff] }
  0x9d   :  { %vm1422_vm0 = vcmp.eq.s32.totalorder %v1761_v12, 1  ;;  %vm1429_vm2 = vcmp.eq.s32.totalorder %v1764_v10, 1  ;;  %v377_v28 = vmax.f32 %v312_v43, %v1767_v45  ;;  %v378_v4 = vmax.f32 %v313_v31, %v1768_v38  ;;  %v1789_v12 = vld [vmem:[#allocation3_spill] sm:$0xff] }
  0x9e   :  { %vm1444_vm1 = vcmp.eq.s32.totalorder %v1769_v17, 1  ;;  %v626_v55 = vrot.slane %v1063_v41, %v845_v9  ;;  %v630_v0 = vrot.slane %v1063_v41, %v858_v14  ;;  %v447_v18 = vsel %vm1331_vm15, %v392_v34, -1e+30 }
  0x9f   :  { %v1773_v58 = vcombine.high %v1772_v3, %v1772_v3  ;;  %v1774_v35 = vcombine.high %v989_v52, %v989_v52  ;;  %v1777_v27 = vsel %vm1033_vm14, %v1776_v6, -1e+30  ;;  %v1778_v20 = vrot.slane %v1103_v33, %v860_v15  ;;  %v1799_v6 = vld [vmem:[#allocation4_spill] sm:$0xff] }
  0xa0   :  { %v462_v1 = vpop.permute.xlu1 %461  ;;  %v460_v5 = vpop.permute.xlu0 %459  ;;  %v379_v25 = vmax.f32 %v314_v60, %v1777_v27  ;;  %v1781_v47 = vrot.slane %v922_v42, %v860_v15  ;;  %v1782_v52 = vrot.slane %v922_v42, %v845_v9  ;;  %v1783_v43 = vrot.slane %v922_v42, %v858_v14 }
  0xa1   :  { %v350_v26 = vadd.f32 %v1773_v58, %v285_v54  ;;  %v348_v30 = vadd.f32 %v1774_v35, %v283_v48  ;;  %vm1467_vm4 = vcmp.eq.s32.totalorder %v1778_v20, 1  ;;  %v466_v23 = vsel %vm1663_vm9, %v456_v63, %v458_v2 }
  0xa2   :  { %v420_v11 = vmul.f32 %v1781_v47, %v393_v7  ;;  %v418_v31 = vmul.f32 %v1782_v52, %v391_v46  ;;  %v419_v34 = vmul.f32 %v1783_v43, %v390_v44  ;;  %v1784_v48 = vrot.slane %v1103_v33, %v845_v9 }
  0xa3   :  { %v421_v54 = vadd.f32 %v417_v24, %v347_v40  ;;  %vm1788_vm12 = vnez %v1787_v36  ;;  %v450_v42 = vsel %vm1353_vm11, %v393_v7, -1e+30  ;;  %v349_v38 = vadd.f32 %v1772_v3, %v284_v57 }
  0xa4   :  { %vm1485_vm15 = vcmp.eq.s32.totalorder %v1784_v48, 1  ;;  %v1790_v10 = vsel %vm1788_vm12, %v1789_v12, -1e+30  ;;  %v1791_v17 = vrot.slane %v1103_v33, %v858_v14  ;;  %v1794_v40 = vrot.slane %v1166_v13, %v843_v8  ;;  %v532_v7 = vpop.permute.xlu1 %531  ;;  %v530_v3 = vpop.permute.xlu0 %529 }
  0xa5   :  { %v380_v45 = vmax.f32 %v315_v56, %v1790_v10  ;;  %v451_v56 = vmax.f32 %v377_v28, %v447_v18  ;;  %v448_v53 = vsel %vm1370_vm6, %v391_v46, -1e+30  ;;  %vm1797_vm11 = vcmp.lt.s32.totalorder %v862_v16, 113 }
  0xa6   :  { %vm1500_vm9 = vcmp.eq.s32.totalorder %v1791_v17, 1  ;;  %vm1507_vm3 = vcmp.eq.s32.totalorder %v1794_v40, 1  ;;  %v467_v57 = vsel %vm1797_vm11, %v462_v1, %v456_v63  ;;  %vm1798_vm14 = vmmov %vm1797_vm11  ;;  %v449_v35 = vsel %vm1382_vm8, %v390_v44, -1e+30  ;;  %v1817_v17 = vld [vmem:[#allocation5_spill] sm:$0xff] }
  0xa7   :  { %v465_v33 = vsel %vm1798_vm14, %v458_v2, %v460_v5  ;;  %v1800_v27 = vrot.slane %v1799_v6, %v843_v8  ;;  %v521_v28 = vsel %vm1389_vm5, %v466_v23, -1e+30  ;;  %vm1801_vm6 = vmmov %vm1797_vm11  ;;  %v424_v46 = vadd.f32 %v420_v11, %v350_v26 }
  0xa8   :  { %v464_v19 = vsel %vm1801_vm6, %v460_v5, %v462_v1  ;;  %v454_v63 = vmax.f32 %v380_v45, %v450_v42  ;;  %v422_v18 = vadd.f32 %v418_v31, %v348_v30  ;;  %v423_v47 = vadd.f32 %v419_v34, %v349_v38  ;;  %v536_v34 = vpop.permute.xlu1 %535 }
  0xa9   :  { %v491_v20 = vmul.f32 %v1800_v27, %v466_v23  ;;  %v1802_v2 = vrot.slane %v1799_v6, %v860_v15  ;;  %v524_v49 = vsel %vm1400_vm10, %v467_v57, -1e+30  ;;  %v1803_v44 = vrot.slane %v1799_v6, %v845_v9  ;;  %v534_v23 = vpop.permute.xlu0 %533 }
  0xaa   :  { %vm1804_vm14 = vcmp.lt.s32.totalorder %v862_v16, 112  ;;  %v1805_v1 = vrot.slane %v1166_v13, %v860_v15  ;;  %v452_v26 = vmax.f32 %v378_v4, %v448_v53  ;;  %v453_v30 = vmax.f32 %v379_v25, %v449_v35 }
  0xab   :  { %v494_v52 = vmul.f32 %v1802_v2, %v467_v57  ;;  %v492_v43 = vmul.f32 %v1803_v44, %v465_v33  ;;  %v540_v51 = vsel %vm1804_vm14, %v530_v3, %v532_v7  ;;  %v525_v11 = vmax.f32 %v451_v56, %v521_v28  ;;  %vm1812_vm10 = vmmov %vm1804_vm14 }
  0xac   :  { %vm1539_vm8 = vcmp.eq.s32.totalorder %v1805_v1, 1  ;;  %v1808_v22 = vrot.slane %v1799_v6, %v858_v14  ;;  %v1809_v48 = vrot.slane %v1166_v13, %v845_v9  ;;  %v495_v10 = vadd.f32 %v491_v20, %v421_v54  ;;  %vm1813_vm11 = vmmov %vm1812_vm10  ;;  %v606_v20 = vpop.permute.xlu1 %605 }
  0xad   :  { %v541_v45 = vsel %vm1812_vm10, %v536_v34, %v530_v3  ;;  %v538_v4 = vsel %vm1813_vm11, %v534_v23, %v536_v34  ;;  %vm1814_vm6 = vmmov %vm1812_vm10  ;;  %vm1562_vm14 = vcmp.eq.s32.totalorder %v660_v29, 1  ;;  %v528_v38 = vmax.f32 %v454_v63, %v524_v49  ;;  %v604_v59 = vpop.permute.xlu0 %603 }
  0xae   :  { %v493_v31 = vmul.f32 %v1808_v22, %v464_v19  ;;  %vm1549_vm5 = vcmp.eq.s32.totalorder %v1809_v48, 1  ;;  %v539_v25 = vsel %vm1814_vm6, %v532_v7, %v534_v23  ;;  %v522_v54 = vsel %vm1422_vm0, %v465_v33, -1e+30 }
  0xaf   :  { %v1818_v40 = vrot.slane %v1817_v17, %v843_v8  ;;  %v595_v53 = vsel %vm1429_vm2, %v540_v51, -1e+30  ;;  %v498_v57 = vadd.f32 %v494_v52, %v424_v46  ;;  %v496_v7 = vadd.f32 %v492_v43, %v422_v18 }
  0xb0   :  { %v523_v13 = vsel %vm1444_vm1, %v464_v19, -1e+30  ;;  %v1819_v29 = vrot.slane %v1817_v17, %v860_v15  ;;  %vm681_vm10 = vcmask 1043456   ;;  %v497_v35 = vadd.f32 %v493_v31, %v423_v47  ;;  %v610_v22 = vpop.permute.xlu1 %609 }
  0xb1   :  { %v565_v56 = vmul.f32 %v1818_v40, %v540_v51  ;;  %v598_v21 = vsel %vm1467_vm4, %v541_v45, -1e+30  ;;  %v1820_v33 = vrot.slane %v1817_v17, %v845_v9  ;;  %v1821_v39 = vrot.slane %v1817_v17, %v858_v14  ;;  %v608_v31 = vpop.permute.xlu0 %607 }
  0xb2   :  { %v568_v3 = vmul.f32 %v1819_v29, %v541_v45  ;;  %v526_v28 = vmax.f32 %v452_v26, %v522_v54  ;;  %v599_v19 = vmax.f32 %v525_v11, %v595_v53  ;;  %v596_v46 = vsel %vm1485_vm15, %v539_v25, -1e+30 }
  0xb3   :  { %v566_v6 = vmul.f32 %v1820_v33, %v539_v25  ;;  %v567_v27 = vmul.f32 %v1821_v39, %v538_v4  ;;  %vm1822_vm0 = vcmp.lt.s32.totalorder %v862_v16, 111  ;;  %v569_v62 = vadd.f32 %v565_v56, %v495_v10 }
  0xb4   :  { %v614_v63 = vsel %vm1822_vm0, %v604_v59, %v606_v20  ;;  %v597_v18 = vsel %vm1500_vm9, %v538_v4, -1e+30  ;;  %v1823_v47 = vrot.slane %v1063_v41, %v843_v8  ;;  %v527_v49 = vmax.f32 %v453_v30, %v523_v13  ;;  %vm1824_vm9 = vmmov %vm1822_vm0 }
  0xb5   :  { %v669_v52 = vsel %vm1507_vm3, %v614_v63, -1e+30  ;;  %v572_v44 = vadd.f32 %v568_v3, %v498_v57  ;;  %v602_v43 = vmax.f32 %v528_v38, %v598_v21  ;;  %v570_v60 = vadd.f32 %v566_v6, %v496_v7  ;;  %vm1825_vm2 = vmmov %vm1822_vm0 }
  0xb6   :  { %v639_v2 = vmul.f32 %v1823_v47, %v614_v63  ;;  %v673_v51 = vmax.f32 %v599_v19, %v669_v52  ;;  %v571_v1 = vadd.f32 %v567_v27, %v497_v35  ;;  %v600_v26 = vmax.f32 %v526_v28, %v596_v46  ;;  %vm1826_vm1 = vmmov %vm1822_vm0 }
  0xb7   :  { %v601_v34 = vmax.f32 %v527_v49, %v597_v18  ;;  %v615_v58 = vsel %vm1824_vm9, %v610_v22, %v604_v59  ;;  %v612_v8 = vsel %vm1825_vm2, %v608_v31, %v610_v22  ;;  %v613_v24 = vsel %vm1826_vm1, %v606_v20, %v608_v31 }
  0xb8   :  { %v643_v11 = vadd.f32 %v639_v2, %v569_v62  ;;  %v677_v30 = vsel %vm972_vm7, %v673_v51, 0.0  ;;  %v642_v48 = vmul.f32 %v634_v50, %v615_v58  ;;  %v672_v10 = vsel %vm1539_vm8, %v615_v58, -1e+30 }
  0xb9   :  { %v676_v45 = vmax.f32 %v602_v43, %v672_v10  ;;  %v640_v4 = vmul.f32 %v626_v55, %v613_v24  ;;  %v641_v16 = vmul.f32 %v630_v0, %v612_v8  ;;  %v670_v37 = vsel %vm1549_vm5, %v613_v24, -1e+30 }
  0xba   :  { %v691_v23 = vmul.f32 %v643_v11, %v643_v11  ;;  %v671_v25 = vsel %vm1562_vm14, %v612_v8, -1e+30  ;;  %v674_v15 = vmax.f32 %v600_v26, %v670_v37  ;;  %v646_v50 = vadd.f32 %v642_v48, %v572_v44 }
  0xbb   :  { %v713_v38 = vmul.f32 %v677_v30, %v677_v30  ;;  %v644_v5 = vadd.f32 %v640_v4, %v570_v60  ;;  %v645_v54 = vadd.f32 %v641_v16, %v571_v1  ;;  %v675_v17 = vmax.f32 %v601_v34, %v671_v25 }
  0xbc   :  { %v678_v9 = vsel %vm1027_vm13, %v674_v15, 0.0  ;;  %v682_v55 = vsel %vm681_vm10, %v643_v11, 0.0  ;;  %v687_v14 = vsel %vm681_vm10, %v646_v50, 0.0  ;;  %v695_v41 = vsel %vm681_vm10, %v691_v23, 0.0 }
  0xbd   :  { %v692_v0 = vmul.f32 %v644_v5, %v644_v5  ;;  %v683_v12 = vsel %vm681_vm10, %v644_v5, 0.0  ;;  %v694_v42 = vmul.f32 %v646_v50, %v646_v50  ;;  %v680_v40 = vsel %vm1788_vm12, %v676_v45, 0.0 }
  0xbe   :  { %v714_v56 = vmul.f32 %v678_v9, %v678_v9  ;;  %v684_v53 = vadd.f32 %v683_v12, %v682_v55  ;;  %v693_v57 = vmul.f32 %v645_v54, %v645_v54  ;;  %vm1827_vm7 = vnez %v1775_v32 }
  0xbf   :  { %v679_v61 = vsel %vm1827_vm7, %v675_v17, 0.0  ;;  %v685_v7 = vsel %vm681_vm10, %v645_v54, 0.0  ;;  %v696_v13 = vsel %vm681_vm10, %v692_v0, 0.0  ;;  %v704_v29 = vsel %vm681_vm10, %v677_v30, 0.0 }
  0xc0   :  { %v705_v3 = vsel %vm681_vm10, %v678_v9, 0.0  ;;  %v686_v35 = vadd.f32 %v685_v7, %v684_v53  ;;  %v697_v21 = vadd.f32 %v696_v13, %v695_v41  ;;  %v707_v36 = vsel %vm681_vm10, %v679_v61, 0.0 }
  0xc1   :  { %v706_v33 = vadd.f32 %v705_v3, %v704_v29  ;;  %v698_v6 = vsel %vm681_vm10, %v693_v57, 0.0  ;;  %v715_v39 = vmul.f32 %v679_v61, %v679_v61  ;;  %v716_v27 = vmul.f32 %v680_v40, %v680_v40 }
  0xc2   :  { %v717_v32 = vsel %vm681_vm10, %v713_v38, 0.0  ;;  %v688_v20 = vadd.f32 %v687_v14, %v686_v35  ;;  %v699_v59 = vadd.f32 %v698_v6, %v697_v21  ;;  %v718_v19 = vsel %vm681_vm10, %v714_v56, 0.0 }
  0xc3   :  { %v708_v28 = vadd.f32 %v707_v36, %v706_v33  ;;  %v700_v46 = vsel %vm681_vm10, %v694_v42, 0.0  ;;  %v709_v63 = vsel %vm681_vm10, %v680_v40, 0.0  ;;  %v719_v62 = vadd.f32 %v718_v19, %v717_v32 }
  0xc4   :  { %689 = vadd.xlane.f32.xlu0 %v688_v20  ;;  %v701_v18 = vadd.f32 %v700_v46, %v699_v59  ;;  %v720_v2 = vsel %vm681_vm10, %v715_v39, 0.0  ;;  %v722_v49 = vsel %vm681_vm10, %v716_v27, 0.0  ;;  %vm726_vm13 = vcmask 7168  }
  0xc5   :  { %v710_v47 = vadd.f32 %v709_v63, %v708_v28  ;;  %v721_v52 = vadd.f32 %v720_v2, %v719_v62  ;;  %vm728_vm12 = vcmask 15360   ;;  %vm730_vm4 = vcmask 23552  }
  0xc6   :  { %702 = vadd.xlane.f32.xlu1 %v701_v18  ;;  %vm732_vm15 = vcmask 27648  }
  0xc7   :  { %v723_v44 = vadd.f32 %v722_v49, %v721_v52 }
  0xc8   :  { %711 = vadd.xlane.f32.xlu0 %v710_v47 }
  0xcc   :  { %724 = vadd.xlane.f32.xlu0 %v723_v44 }
 0x14d   :  { %v690_v43 = vpop.xlane.xlu0 %689 }
 0x14f   :  { %v703_v51 = vpop.xlane.xlu1 %702 }
 0x150   :  { %v727_v1 = vsel %vm726_vm13, %v690_v43, %v703_v51 }
 0x151   :  { %v712_v60 = vpop.xlane.xlu0 %711 }
 0x152   :  { %v729_v26 = vsel %vm728_vm12, %v727_v1, %v712_v60 }
 0x155   :  { %v725_v11 = vpop.xlane.xlu0 %724 }
 0x156   :  { %v731_v22 = vsel %vm730_vm4, %v729_v26, %v725_v11 }
 0x157   :  { %733 = vst.msk [vmem:[%s1647_s2] sm:$0xf] %vm732_vm15, %v731_v22 }

// kernel: mixed_op.3
= control target key start
LH: loop header
LB: loop body
LE: loop exit
PB: predicated region body
PF: predicated region fallthrough
CT: control target
= control target key end

     0   :  { %v43_v0 = vlaneseq  ;;  %v2320_v3 = vmov 0   ;;  %v2321_v4 = vmov 3   ;;  %s2322_s19 = smov 17   ;;  %v3345_v11 = vmov 0.0   ;;  %s2324_s25 = smov 16   ;;  %s3340_s0 = inlined_call_operand.vmem [shape: f32[4,512], index: 0, kind: input, shape index: {}]   ;;  %s3341_s1 = inlined_call_operand.vmem [shape: f32[9,512], index: 1, kind: input, shape index: {}]   ;;  %s3342_s3 = inlined_call_operand.vmem [shape: f32[4,4], index: 3, kind: input, shape index: {}]   ;;  %s3343_s2 = inlined_call_operand.vmem [shape: f32[9,4,4], index: 2, kind: input, shape index: {}]   ;;  %s3344_s4 = inlined_call_operand.vmem [shape: f32[4,512], index: 4, kind: output, shape index: {}]  }
   0x1   :  { %v2361_v1 = vld [vmem:[%s3340_s0 + $0x8] sm:$0xff]  ;;  %v2366_v2 = vld [vmem:[%s3340_s0] sm:$0xff]  ;;  %2315 = vset.pattern.permute.xlu1 %v2320_v3  ;;  %2314 = vset.pattern.permute.xlu0 %v2321_v4  ;;  %s2325_s30 = smov 15   ;;  %s2326_s7 = smov 1   ;;  %v2331_v60 = vmov 1   ;;  %vm93_vm10 = vcmask 1043456  }
   0x2   :  { %39 = vrot.lane.b32.xlu1 %v2361_v1, %s2322_s19  ;;  %35 = vrot.lane.b32.xlu0 %v2366_v2, %s2322_s19  ;;  %v2373_v5 = vcombine.high %v2361_v1, %v2361_v1  ;;  %v2377_v6 = vcombine.high %v2366_v2, %v2366_v2  ;;  %v2382_v7 = vld [vmem:[%s3341_s1] ss:$8 sm:$0xf]  ;;  %v53_v8 = vshrl.u32 %v43_v0, 7  ;;  %s2327_s10 = smov 127   ;;  %s2328_s13 = smov 113  }
   0x3   :  { %vm252_vm0 = vcmp.ne.f32.partialorder %v2382_v7, 0.0  ;;  %v2392_v10 = vld [vmem:[%s3341_s1 + $0x1] ss:$8 sm:$0xf]  ;;  %170 = vmatprep.mubr.f32.mxu0 %v3345_v11  ;;  %241 = vmatprep.mubr.f32.mxu1 %v3345_v11  ;;  %s2330_s16 = smov 111   ;;  %v2577_v4 = vand.u32 127, %v43_v0 }
   0x4   :  { %v2387_v9 = vsel %vm252_vm0, 1, %v2320_v3  ;;  %v2396_v12 = vsub.s32 0, %v53_v8  ;;  %v2398_v13 = vsub.s32 1, %v53_v8  ;;  %v2400_v14 = vsub.s32 2, %v53_v8  ;;  %v88_v54 = vld [vmem:[%s3343_s2] sm:$0xf] }
   0x5   :  { %v2402_v15 = vsub.s32 3, %v53_v8  ;;  %vm493_vm1 = vcmp.ne.f32.partialorder %v2392_v10, 0.0  ;;  %v2421_v21 = vld [vmem:[%s3341_s1 + $0x2] ss:$8 sm:$0xf]  ;;  %v2332_v8 = vmov 2  }
   0x6   :  { %41 = vrot.lane.b32.xlu1 %v2373_v5, %s2322_s19  ;;  %37 = vrot.lane.b32.xlu0 %v2377_v6, %s2322_s19  ;;  %v257_v16 = vrot.slane %v2387_v9, %v2396_v12  ;;  %v261_v18 = vrot.slane %v2387_v9, %v2398_v13  ;;  %v265_v19 = vrot.slane %v2387_v9, %v2400_v14  ;;  %v2416_v20 = vsel %vm493_vm1, 1, %v2320_v3  ;;  %v2440_v27 = vld [vmem:[%s3341_s1 + $0x3] ss:$8 sm:$0xf] }
   0x7   :  { %v269_v17 = vrot.slane %v2387_v9, %v2402_v15  ;;  %v502_v22 = vrot.slane %v2416_v20, %v2398_v13  ;;  %v498_v23 = vrot.slane %v2416_v20, %v2396_v12  ;;  %v506_v24 = vrot.slane %v2416_v20, %v2400_v14  ;;  %v2455_v32 = vld [vmem:[%s3341_s1 + $0x4] ss:$8 sm:$0xf]  ;;  %v2471_v36 = vld [vmem:[%s3341_s1 + $0x5] ss:$8 sm:$0xf] }
   0x8   :  { %v510_v25 = vrot.slane %v2416_v20, %v2402_v15  ;;  %vm734_vm2 = vcmp.ne.f32.partialorder %v2421_v21, 0.0  ;;  %vm975_vm3 = vcmp.ne.f32.partialorder %v2440_v27, 0.0  ;;  %vm1203_vm4 = vcmp.ne.f32.partialorder %v2455_v32, 0.0  ;;  %v2503_v47 = vld [vmem:[%s3341_s1 + $0x6] ss:$8 sm:$0xf] }
   0x9   :  { %v2435_v26 = vsel %vm734_vm2, 1, %v2320_v3  ;;  %v2459_v33 = vsel %vm975_vm3, 1, %v2320_v3  ;;  %v2478_v39 = vsel %vm1203_vm4, 1, %v2320_v3  ;;  %vm1444_vm5 = vcmp.ne.f32.partialorder %v2471_v36, 0.0 }
   0xa   :  { %284 = vrot.lane.b32.xlu1 %v2377_v6, %s2324_s25  ;;  %282 = vrot.lane.b32.xlu0 %v2366_v2, %s2324_s25  ;;  %v743_v28 = vrot.slane %v2435_v26, %v2398_v13  ;;  %v739_v29 = vrot.slane %v2435_v26, %v2396_v12  ;;  %v747_v30 = vrot.slane %v2435_v26, %v2400_v14  ;;  %v2486_v41 = vsel %vm1444_vm5, 1, %v2320_v3  ;;  %v2528_v55 = vld [vmem:[%s3341_s1 + $0x7] ss:$8 sm:$0xf] }
   0xb   :  { %v751_v31 = vrot.slane %v2435_v26, %v2402_v15  ;;  %v984_v34 = vrot.slane %v2459_v33, %v2398_v13  ;;  %v980_v35 = vrot.slane %v2459_v33, %v2396_v12  ;;  %v988_v37 = vrot.slane %v2459_v33, %v2400_v14  ;;  %v2549_v61 = vld [vmem:[%s3341_s1 + $0x20] ss:$8 sm:$0xf]  ;;  %s2329_s1 = smov 112  }
   0xc   :  { %v1208_v40 = vrot.slane %v2478_v39, %v2396_v12  ;;  %v1212_v45 = vrot.slane %v2478_v39, %v2398_v13  ;;  %vm1685_vm6 = vcmp.ne.f32.partialorder %v2503_v47, 0.0  ;;  %vm1926_vm7 = vcmp.ne.f32.partialorder %v2528_v55, 0.0 }
   0xd   :  { %v2513_v50 = vsel %vm1685_vm6, 1, %v2320_v3  ;;  %v2532_v56 = vsel %vm1926_vm7, 1, %v2320_v3  ;;  %vm2167_vm8 = vcmp.ne.f32.partialorder %v2549_v61, 0.0  ;;  %vm45_vm9 = vcmp.lt.s32.totalorder %v2577_v4, 17 }
   0xe   :  { %288 = vrot.lane.b32.xlu1 %v2373_v5, %s2324_s25  ;;  %286 = vrot.lane.b32.xlu0 %v2361_v1, %s2324_s25  ;;  %v2553_v62 = vsel %vm2167_vm8, 1, %v2320_v3  ;;  %v19_v3 = vld [vmem:[%s3342_s3] sm:$0xf]  ;;  %v63_v58 = vrot.slane %v2382_v7, %v2400_v14  ;;  %vm290_vm11 = vcmp.lt.s32.totalorder %v2577_v4, 16  ;;  %vm2588_vm12 = vcmp.eq.s32.totalorder %v257_v16, 1 }
   0xf   :  { %vm2595_vm13 = vcmp.eq.s32.totalorder %v269_v17, 1  ;;  %vm2604_vm14 = vcmp.eq.s32.totalorder %v261_v18, 1  ;;  %vm2611_vm15 = vcmp.eq.s32.totalorder %v265_v19, 1  ;;  %v59_v53 = vrot.slane %v2382_v7, %v2398_v13 }
  0x10   :  { %vm89_vm0 = vcmask 31744   ;;  %v305_v48 = vrot.slane %v2392_v10, %v2398_v13  ;;  %vm531_vm1 = vcmp.lt.s32.totalorder %v2577_v4, 15  ;;  %vm2643_vm2 = vcmp.eq.s32.totalorder %v502_v22, 1 }
  0x11   :  { %v309_v22 = vrot.slane %v2392_v10, %v2400_v14  ;;  %v546_v16 = vrot.slane %v2421_v21, %v2398_v13  ;;  %vm2677_vm3 = vcmp.eq.s32.totalorder %v498_v23, 1  ;;  %vm2684_vm4 = vcmp.eq.s32.totalorder %v506_v24, 1 }
  0x12   :  { %525 = vrot.lane.b32.xlu1 %v2377_v6, %s2325_s30  ;;  %523 = vrot.lane.b32.xlu0 %v2366_v2, %s2325_s30  ;;  %vm2694_vm5 = vcmp.eq.s32.totalorder %v510_v25, 1  ;;  %v550_v24 = vrot.slane %v2421_v21, %v2400_v14  ;;  %v1011_v20 = vrot.slane %v2455_v32, %v2396_v12  ;;  %v1015_v25 = vrot.slane %v2455_v32, %v2398_v13 }
  0x13   :  { %vm2735_vm6 = vcmp.eq.s32.totalorder %v743_v28, 1  ;;  %vm772_vm7 = vcmp.lt.s32.totalorder %v2577_v4, 1  ;;  %vm2754_vm8 = vcmp.eq.s32.totalorder %v739_v29, 1 }
  0x16   :  { %529 = vrot.lane.b32.xlu1 %v2373_v5, %s2325_s30  ;;  %527 = vrot.lane.b32.xlu0 %v2361_v1, %s2325_s30 }
  0x1a   :  { %766 = vrot.lane.b32.xlu1 %v2377_v6, %s2326_s7  ;;  %764 = vrot.lane.b32.xlu0 %v2366_v2, %s2326_s7 }
  0x1e   :  { %770 = vrot.lane.b32.xlu1 %v2373_v5, %s2326_s7  ;;  %768 = vrot.lane.b32.xlu0 %v2361_v1, %s2326_s7 }
  0x22   :  { %1235 = vrot.lane.b32.xlu1 %v2377_v6, %s2327_s10  ;;  %1233 = vrot.lane.b32.xlu0 %v2366_v2, %s2327_s10 }
  0x26   :  { %1239 = vrot.lane.b32.xlu1 %v2373_v5, %s2327_s10  ;;  %1237 = vrot.lane.b32.xlu0 %v2361_v1, %s2327_s10 }
  0x2a   :  { %1476 = vrot.lane.b32.xlu1 %v2377_v6, %s2328_s13  ;;  %1474 = vrot.lane.b32.xlu0 %v2366_v2, %s2328_s13 }
  0x2e   :  { %1480 = vrot.lane.b32.xlu1 %v2373_v5, %s2328_s13  ;;  %1478 = vrot.lane.b32.xlu0 %v2361_v1, %s2328_s13 }
  0x32   :  { %1717 = vrot.lane.b32.xlu1 %v2377_v6, %s2329_s1  ;;  %1715 = vrot.lane.b32.xlu0 %v2366_v2, %s2329_s1 }
  0x36   :  { %1721 = vrot.lane.b32.xlu1 %v2373_v5, %s2329_s1  ;;  %1719 = vrot.lane.b32.xlu0 %v2361_v1, %s2329_s1 }
  0x3a   :  { %1958 = vrot.lane.b32.xlu1 %v2377_v6, %s2330_s16  ;;  %1956 = vrot.lane.b32.xlu0 %v2366_v2, %s2330_s16 }
  0x3e   :  { %1962 = vrot.lane.b32.xlu1 %v2373_v5, %s2330_s16  ;;  %1960 = vrot.lane.b32.xlu0 %v2361_v1, %s2330_s16 }
  0x42   :  { %77 = vperm.xlu1 %2315, %v19_v3   ;;  %22 = vperm.xlu0 %2314, %v19_v3  }
  0x46   :  { %2316 = vset.pattern.permute.xlu1 %v2331_v60  ;;  %2317 = vset.pattern.permute.xlu0 %v2332_v8  ;;  %v55_v60 = vrot.slane %v2382_v7, %v2396_v12 }
  0x47   :  { %2198 = vperm.xlu1 %2316, %v19_v3   ;;  %2210 = vperm.xlu0 %2317, %v19_v3   ;;  %v67_v3 = vrot.slane %v2382_v7, %v2402_v15 }
  0x74   :  { %v40_v63 = vpop.permute.xlu1 %39  ;;  %v36_v59 = vpop.permute.xlu0 %35 }
  0x78   :  { %v42_v57 = vpop.permute.xlu1 %41  ;;  %v38_v17 = vpop.permute.xlu0 %37 }
  0x79   :  { %v46_v52 = vsel %vm45_vm9, %v40_v63, %v42_v57  ;;  %v49_v18 = vsel %vm45_vm9, %v42_v57, %v36_v59  ;;  %v47_v51 = vsel %vm45_vm9, %v38_v17, %v40_v63  ;;  %v48_v9 = vsel %vm45_vm9, %v36_v59, %v38_v17 }
  0x7a   :  { %v274_v19 = vsel %vm2588_vm12, %v49_v18, -1e+30  ;;  %v277_v49 = vsel %vm2595_vm13, %v46_v52, -1e+30  ;;  %v2629_v7 = vmul.f32 %v63_v58, %v47_v51  ;;  %v2634_v57 = vmul.f32 %v55_v60, %v49_v18 }
  0x7b   :  { %v275_v63 = vsel %vm2604_vm14, %v48_v9, -1e+30  ;;  %v2638_v44 = vmul.f32 %v67_v3, %v46_v52  ;;  %v276_v58 = vsel %vm2611_vm15, %v47_v51, -1e+30  ;;  %v2649_v0 = vmul.f32 %v59_v53, %v48_v9 }
  0x7c   :  { %v285_v8 = vpop.permute.xlu1 %284  ;;  %v283_v60 = vpop.permute.xlu0 %282  ;;  %v301_v52 = vrot.slane %v2392_v10, %v2396_v12  ;;  %v279_v3 = vmax.f32 %v275_v63, -1e+30  ;;  %v313_v53 = vrot.slane %v2392_v10, %v2402_v15  ;;  %v542_v63 = vrot.slane %v2421_v21, %v2396_v12 }
  0x7d   :  { %2234 = vmatprep.subr.msk.mxu1 %vm93_vm10, %v2638_v44  ;;  %v293_v51 = vsel %vm290_vm11, %v283_v60, %v285_v8  ;;  %2231 = vmatprep.subr.msk.mxu0 %vm93_vm10, %v2649_v0  ;;  %v278_v59 = vmax.f32 %v274_v19, -1e+30  ;;  %v280_v46 = vmax.f32 %v276_v58, -1e+30  ;;  %v554_v9 = vrot.slane %v2421_v21, %v2402_v15 }
  0x7e   :  { %v2668_v17 = vmul.f32 %v305_v48, %v293_v51  ;;  %v516_v18 = vsel %vm2643_vm2, %v293_v51, -1e+30  ;;  %2235 = vmatpush1.msk.msra.mxu1 %vm93_vm10, %v2629_v7  ;;  %2232 = vmatpush1.msk.msra.mxu0 %vm93_vm10, %v2634_v57  ;;  %v787_v21 = vrot.slane %v2440_v27, %v2398_v13  ;;  %v1024_v10 = vcombine.low %v1011_v20, %v1015_v25 }
  0x7f   :  { %v520_v48 = vmax.f32 %v279_v3, %v516_v18  ;;  %2236 = vmatmul.mubr.msk.f32.vlgmr.msra.gmra.mxu1 %vm89_vm0, %v88_v54  ;;  %v281_v3 = vmax.f32 %v277_v49, -1e+30  ;;  %2233 = vmatmul.mubr.msk.f32.vlgmr.msra.gmra.mxu0 %vm89_vm0, %v88_v54  ;;  %vm2768_vm9 = vcmp.eq.s32.totalorder %v747_v30, 1  ;;  %v783_v20 = vrot.slane %v2440_v27, %v2396_v12 }
  0x80   :  { %v289_v51 = vpop.permute.xlu1 %288  ;;  %2239 = vmatprep.subr.msk.mxu0 %vm93_vm10, %v2668_v17  ;;  %v287_v18 = vpop.permute.xlu0 %286  ;;  %411 = vmatprep.mubr.f32.mxu0 %v3345_v11  ;;  %v791_v30 = vrot.slane %v2440_v27, %v2400_v14  ;;  %v795_v25 = vrot.slane %v2440_v27, %v2402_v15  ;;  %vm2792_vm12 = vcmp.eq.s32.totalorder %v984_v34, 1  ;;  %vm2799_vm13 = vcmp.eq.s32.totalorder %v980_v35, 1 }
  0x81   :  { %v294_v42 = vsel %vm290_vm11, %v289_v51, %v283_v60  ;;  %v291_v49 = vsel %vm290_vm11, %v287_v18, %v289_v51  ;;  %v292_v19 = vsel %vm290_vm11, %v285_v8, %v287_v18  ;;  %482 = vmatprep.mubr.f32.mxu1 %v3345_v11  ;;  %v2238_v60 = vld [vmem:[%s3343_s2 + $0x4] sm:$0xf]  ;;  %vm2775_vm11 = vcmp.eq.s32.totalorder %v751_v31, 1 }
  0x82   :  { %v2717_v54 = vmul.f32 %v301_v52, %v294_v42  ;;  %v515_v43 = vsel %vm2677_vm3, %v294_v42, -1e+30  ;;  %v2721_v38 = vmul.f32 %v309_v22, %v292_v19  ;;  %v2723_v58 = vmul.f32 %v313_v53, %v291_v49 }
  0x83   :  { %v519_v51 = vmax.f32 %v278_v59, %v515_v43  ;;  %v517_v8 = vsel %vm2684_vm4, %v292_v19, -1e+30  ;;  %v518_v18 = vsel %vm2694_vm5, %v291_v49, -1e+30  ;;  %v1019_v27 = vrot.slane %v2455_v32, %v2400_v14 }
  0x84   :  { %v521_v52 = vmax.f32 %v280_v46, %v517_v8  ;;  %v522_v22 = vmax.f32 %v281_v3, %v518_v18  ;;  %v526_v53 = vpop.permute.xlu1 %525  ;;  %2240 = vmatpush1.msk.msra.mxu0 %vm93_vm10, %v2717_v54  ;;  %2242 = vmatprep.subr.msk.mxu1 %vm93_vm10, %v2723_v58  ;;  %v524_v43 = vpop.permute.xlu0 %523  ;;  %v1023_v19 = vrot.slane %v2455_v32, %v2402_v15  ;;  %vm2834_vm14 = vcmp.eq.s32.totalorder %v1212_v45, 1 }
  0x85   :  { %v534_v28 = vsel %vm531_vm1, %v524_v43, %v526_v53  ;;  %2241 = vmatmul.mubr.msk.f32.vlgmr.msra.gmra.mxu0 %vm89_vm0, %v2238_v60  ;;  %2243 = vmatpush1.msk.msra.mxu1 %vm93_vm10, %v2721_v38  ;;  %v2814_v35 = vmul.f32 %v1024_v10, %v2366_v2  ;;  %vm2845_vm15 = vcmp.eq.s32.totalorder %v1208_v40, 1  ;;  %v3381_v40 = vrot.slane %v2459_v33, %v2402_v15 }
  0x86   :  { %v2760_v23 = vmul.f32 %v546_v16, %v534_v28  ;;  %v757_v59 = vsel %vm2735_vm6, %v534_v28, -1e+30  ;;  %2244 = vmatmul.mubr.msk.f32.vlgmr.msra.gmra.mxu1 %vm89_vm0, %v2238_v60  ;;  %652 = vmatprep.mubr.f32.mxu0 %v3345_v11  ;;  %v1025_v45 = vcombine.low %v1019_v27, %v1023_v19  ;;  %vm1241_vm4 = vcmp.lt.s32.totalorder %v2577_v4, 127 }
  0x87   :  { %v761_v16 = vmax.f32 %v520_v48, %v757_v59  ;;  %723 = vmatprep.mubr.f32.mxu1 %v3345_v11  ;;  %vm2864_vm2 = vcmp.eq.s32.totalorder %v3381_v40, 1  ;;  %v1226_v33 = vsel %vm2834_vm14, %v2377_v6, -1e+30  ;;  %v3393_v31 = vrot.slane %v2486_v41, %v2402_v15 }
  0x88   :  { %v530_v49 = vpop.permute.xlu1 %529  ;;  %2247 = vmatprep.subr.msk.mxu0 %vm93_vm10, %v2760_v23  ;;  %v528_v26 = vpop.permute.xlu0 %527 }
  0x89   :  { %v535_v60 = vsel %vm531_vm1, %v530_v49, %v524_v43  ;;  %v532_v34 = vsel %vm531_vm1, %v528_v26, %v530_v49  ;;  %v533_v8 = vsel %vm531_vm1, %v526_v53, %v528_v26  ;;  %v2246_v43 = vld [vmem:[%s3343_s2 + $0x8] sm:$0xf]  ;;  %vm2857_vm1 = vcmp.eq.s32.totalorder %v988_v37, 1 }
  0x8a   :  { %v2816_v18 = vmul.f32 %v542_v63, %v535_v60  ;;  %v756_v42 = vsel %vm2754_vm8, %v535_v60, -1e+30  ;;  %v2820_v28 = vmul.f32 %v550_v24, %v533_v8  ;;  %v2822_v32 = vmul.f32 %v554_v9, %v532_v34 }
  0x8b   :  { %v760_v59 = vmax.f32 %v519_v51, %v756_v42  ;;  %v758_v53 = vsel %vm2768_vm9, %v533_v8, -1e+30  ;;  %v759_v10 = vsel %vm2775_vm11, %v532_v34, -1e+30  ;;  %v3384_v49 = vrot.slane %v2478_v39, %v2402_v15 }
  0x8c   :  { %v762_v24 = vmax.f32 %v521_v52, %v758_v53  ;;  %v763_v9 = vmax.f32 %v522_v22, %v759_v10  ;;  %v767_v46 = vpop.permute.xlu1 %766  ;;  %2248 = vmatpush1.msk.msra.mxu0 %vm93_vm10, %v2816_v18  ;;  %2250 = vmatprep.subr.msk.mxu1 %vm93_vm10, %v2822_v32  ;;  %v765_v51 = vpop.permute.xlu0 %764  ;;  %v1225_v60 = vsel %vm2845_vm15, %v2366_v2, -1e+30  ;;  %v1264_v34 = vrot.slane %v2471_v36, %v2402_v15 }
  0x8d   :  { %v775_v52 = vsel %vm772_vm7, %v765_v51, %v767_v46  ;;  %2249 = vmatmul.mubr.msk.f32.vlgmr.msra.gmra.mxu0 %vm89_vm0, %v2246_v43  ;;  %2251 = vmatpush1.msk.msra.mxu1 %vm93_vm10, %v2820_v28  ;;  %vm2871_vm3 = vcmp.eq.s32.totalorder %v3384_v49, 1  ;;  %v2902_v42 = vcombine.high %v2814_v35, %v2814_v35  ;;  %v2908_v53 = vmul.f32 %v1025_v45, %v2361_v1 }
  0x8e   :  { %v2875_v27 = vmul.f32 %v787_v21, %v775_v52  ;;  %v998_v37 = vsel %vm2792_vm12, %v775_v52, -1e+30  ;;  %2252 = vmatmul.mubr.msk.f32.vlgmr.msra.gmra.mxu1 %vm89_vm0, %v2246_v43  ;;  %893 = vmatprep.mubr.f32.mxu0 %v3345_v11  ;;  %v3387_v21 = vrot.slane %v2486_v41, %v2396_v12  ;;  %v1228_v43 = vsel %vm2871_vm3, %v2373_v5, -1e+30 }
  0x8f   :  { %v1002_v19 = vmax.f32 %v761_v16, %v998_v37  ;;  %964 = vmatprep.mubr.f32.mxu1 %v3345_v11  ;;  %v3390_v10 = vrot.slane %v2478_v39, %v2400_v14  ;;  %v1252_v63 = vrot.slane %v2471_v36, %v2396_v12  ;;  %vm1482_vm11 = vcmp.lt.s32.totalorder %v2577_v4, 113 }
  0x90   :  { %vm2891_vm5 = vcmp.eq.s32.totalorder %v3387_v21, 1  ;;  %v771_v8 = vpop.permute.xlu1 %770  ;;  %2255 = vmatprep.subr.msk.mxu0 %vm93_vm10, %v2875_v27  ;;  %v769_v16 = vpop.permute.xlu0 %768 }
  0x91   :  { %vm2913_vm6 = vcmp.eq.s32.totalorder %v3390_v10, 1  ;;  %v776_v3 = vsel %vm772_vm7, %v771_v8, %v765_v51  ;;  %v773_v52 = vsel %vm772_vm7, %v769_v16, %v771_v8  ;;  %v774_v40 = vsel %vm772_vm7, %v767_v46, %v769_v16  ;;  %v2254_v51 = vld [vmem:[%s3343_s2 + $0xc] sm:$0xf]  ;;  %v2262_v10 = vld [vmem:[%s3343_s2 + $0x10] sm:$0xf] }
  0x92   :  { %v1230_v49 = vmax.f32 %v1002_v19, %v1226_v33  ;;  %v2923_v26 = vmul.f32 %v783_v20, %v776_v3  ;;  %v997_v45 = vsel %vm2799_vm13, %v776_v3, -1e+30  ;;  %v2927_v39 = vmul.f32 %v791_v30, %v774_v40 }
  0x93   :  { %v2929_v37 = vmul.f32 %v795_v25, %v773_v52  ;;  %v1001_v21 = vmax.f32 %v760_v59, %v997_v45  ;;  %v999_v8 = vsel %vm2857_vm1, %v774_v40, -1e+30  ;;  %v1000_v46 = vsel %vm2864_vm2, %v773_v52, -1e+30 }
  0x94   :  { %v1227_v20 = vsel %vm2913_vm6, %v2361_v1, -1e+30  ;;  %v1003_v48 = vmax.f32 %v762_v24, %v999_v8  ;;  %v1004_v30 = vmax.f32 %v763_v9, %v1000_v46  ;;  %v1236_v33 = vpop.permute.xlu1 %1235  ;;  %2256 = vmatpush1.msk.msra.mxu0 %vm93_vm10, %v2923_v26  ;;  %v1234_v25 = vpop.permute.xlu0 %1233  ;;  %v2947_v59 = vcombine.high %v2908_v53, %v2908_v53 }
  0x95   :  { %2258 = vmatprep.subr.msk.mxu1 %vm93_vm10, %v2929_v37  ;;  %v1229_v22 = vmax.f32 %v1001_v21, %v1225_v60  ;;  %v1244_v29 = vsel %vm1241_vm4, %v1234_v25, %v1236_v33  ;;  %2257 = vmatmul.mubr.msk.f32.vlgmr.msra.gmra.mxu0 %vm89_vm0, %v2254_v51  ;;  %v1256_v24 = vrot.slane %v2471_v36, %v2398_v13  ;;  %vm2971_vm7 = vcmp.eq.s32.totalorder %v3393_v31, 1 }
  0x96   :  { %2259 = vmatpush1.msk.msra.mxu1 %vm93_vm10, %v2927_v39  ;;  %v1466_v9 = vsel %vm2891_vm5, %v1244_v29, -1e+30  ;;  %2263 = vmatprep.subr.msk.mxu0 %vm93_vm10, %v2902_v42  ;;  %v1232_v19 = vmax.f32 %v1004_v30, %v1228_v43  ;;  %v1231_v60 = vmax.f32 %v1003_v48, %v1227_v20  ;;  %v1260_v16 = vrot.slane %v2471_v36, %v2400_v14 }
  0x97   :  { %2260 = vmatmul.mubr.msk.f32.vlgmr.msra.gmra.mxu1 %vm89_vm0, %v2254_v51  ;;  %v1470_v3 = vmax.f32 %v1229_v22, %v1466_v9  ;;  %2264 = vmatpush1.msk.msra.mxu0 %vm93_vm10, %v2814_v35  ;;  %v3396_v36 = vrot.slane %v2486_v41, %v2398_v13  ;;  %v3399_v45 = vrot.slane %v2486_v41, %v2400_v14  ;;  %vm1723_vm1 = vcmp.lt.s32.totalorder %v2577_v4, 112 }
  0x98   :  { %1121 = vmatprep.mubr.f32.mxu0 %v3345_v11  ;;  %v1240_v43 = vpop.permute.xlu1 %1239  ;;  %2266 = vmatprep.subr.msk.mxu1 %vm93_vm10, %v2947_v59  ;;  %v1238_v21 = vpop.permute.xlu0 %1237  ;;  %v3402_v41 = vrot.slane %v2513_v50, %v2396_v12  ;;  %v3022_v9 = vmul.f32 %v1252_v63, %v1244_v29  ;;  %v1497_v63 = vrot.slane %v2503_v47, %v2398_v13  ;;  %vm1964_vm6 = vcmp.lt.s32.totalorder %v2577_v4, 111 }
  0x99   :  { %vm2983_vm8 = vcmp.eq.s32.totalorder %v3396_v36, 1  ;;  %vm2990_vm9 = vcmp.eq.s32.totalorder %v3399_v45, 1  ;;  %1192 = vmatprep.mubr.f32.mxu1 %v3345_v11  ;;  %v1245_v8 = vsel %vm1241_vm4, %v1240_v43, %v1234_v25  ;;  %v1242_v46 = vsel %vm1241_vm4, %v1238_v21, %v1240_v43  ;;  %2265 = vmatmul.mubr.msk.f32.vlgmr.msra.gmra.mxu0 %vm89_vm0, %v2262_v10 }
  0x9a   :  { %v1243_v20 = vsel %vm1241_vm4, %v1236_v33, %v1238_v21  ;;  %2267 = vmatpush1.msk.msra.mxu1 %vm93_vm10, %v2908_v53  ;;  %vm3008_vm12 = vcmp.eq.s32.totalorder %v3402_v41, 1  ;;  %v3012_v30 = vmul.f32 %v1264_v34, %v1245_v8  ;;  %v1469_v25 = vsel %vm2971_vm7, %v1245_v8, -1e+30  ;;  %1362 = vmatprep.mubr.f32.mxu0 %v3345_v11 }
  0x9b   :  { %v3016_v22 = vmul.f32 %v1256_v24, %v1243_v20  ;;  %v3018_v33 = vmul.f32 %v1260_v16, %v1242_v46  ;;  %2268 = vmatmul.mubr.msk.f32.vlgmr.msra.gmra.mxu1 %vm89_vm0, %v2262_v10  ;;  %v1473_v31 = vmax.f32 %v1232_v19, %v1469_v25  ;;  %v1467_v43 = vsel %vm2983_vm8, %v1243_v20, -1e+30  ;;  %v2270_v24 = vld [vmem:[%s3343_s2 + $0x14] sm:$0xf] }
  0x9c   :  { %v1468_v34 = vsel %vm2990_vm9, %v1242_v46, -1e+30  ;;  %1433 = vmatprep.mubr.f32.mxu1 %v3345_v11  ;;  %v1471_v16 = vmax.f32 %v1230_v49, %v1467_v43  ;;  %v1477_v10 = vpop.permute.xlu1 %1476  ;;  %2274 = vmatprep.subr.msk.mxu1 %vm93_vm10, %v3012_v30  ;;  %v1475_v29 = vpop.permute.xlu0 %1474  ;;  %v1501_v36 = vrot.slane %v2503_v47, %v2400_v14  ;;  %v1493_v40 = vrot.slane %v2503_v47, %v2396_v12 }
  0x9d   :  { %v1472_v52 = vmax.f32 %v1231_v60, %v1468_v34  ;;  %2271 = vmatprep.subr.msk.mxu0 %vm93_vm10, %v3016_v22  ;;  %v1485_v19 = vsel %vm1482_vm11, %v1475_v29, %v1477_v10  ;;  %2275 = vmatpush1.msk.msra.mxu1 %vm93_vm10, %v3018_v33  ;;  %v1505_v60 = vrot.slane %v2503_v47, %v2402_v15 }
  0x9e   :  { %2272 = vmatpush1.msk.msra.mxu0 %vm93_vm10, %v3022_v9  ;;  %v1707_v49 = vsel %vm3008_vm12, %v1485_v19, -1e+30  ;;  %v3405_v51 = vrot.slane %v2513_v50, %v2402_v15  ;;  %v3408_v46 = vrot.slane %v2513_v50, %v2398_v13  ;;  %v3411_v47 = vrot.slane %v2513_v50, %v2400_v14 }
  0x9f   :  { %2273 = vmatmul.mubr.msk.f32.vlgmr.msra.gmra.mxu0 %vm89_vm0, %v2270_v24  ;;  %2276 = vmatmul.mubr.msk.f32.vlgmr.msra.gmra.mxu1 %vm89_vm0, %v2270_v24  ;;  %v1711_v45 = vmax.f32 %v1470_v3, %v1707_v49  ;;  %v3414_v34 = vrot.slane %v2532_v56, %v2396_v12  ;;  %v3417_v3 = vrot.slane %v2532_v56, %v2402_v15 }
  0xa0   :  { %vm3057_vm13 = vcmp.eq.s32.totalorder %v3405_v51, 1  ;;  %1603 = vmatprep.mubr.f32.mxu0 %v3345_v11  ;;  %1674 = vmatprep.mubr.f32.mxu1 %v3345_v11  ;;  %v1481_v8 = vpop.permute.xlu1 %1480  ;;  %vm3066_vm14 = vcmp.eq.s32.totalorder %v3408_v46, 1  ;;  %vm3073_vm15 = vcmp.eq.s32.totalorder %v3411_v47, 1  ;;  %v1479_v41 = vpop.permute.xlu0 %1478 }
  0xa1   :  { %v1486_v48 = vsel %vm1482_vm11, %v1481_v8, %v1475_v29  ;;  %v1483_v25 = vsel %vm1482_vm11, %v1479_v41, %v1481_v8  ;;  %v1484_v43 = vsel %vm1482_vm11, %v1477_v10, %v1479_v41  ;;  %vm3087_vm2 = vcmp.eq.s32.totalorder %v3414_v34, 1 }
  0xa2   :  { %v3091_v24 = vmul.f32 %v1505_v60, %v1486_v48  ;;  %v1710_v49 = vsel %vm3057_vm13, %v1486_v48, -1e+30  ;;  %v3095_v51 = vmul.f32 %v1497_v63, %v1484_v43  ;;  %v3097_v29 = vmul.f32 %v1501_v36, %v1483_v25  ;;  %v2278_v60 = vld [vmem:[%s3343_s2 + $0x18] sm:$0xf] }
  0xa3   :  { %v3099_v8 = vmul.f32 %v1493_v40, %v1485_v19  ;;  %v1714_v46 = vmax.f32 %v1473_v31, %v1710_v49  ;;  %v1708_v10 = vsel %vm3066_vm14, %v1484_v43, -1e+30  ;;  %v1709_v47 = vsel %vm3073_vm15, %v1483_v25, -1e+30 }
  0xa4   :  { %v1712_v41 = vmax.f32 %v1471_v16, %v1708_v10  ;;  %v1713_v21 = vmax.f32 %v1472_v52, %v1709_v47  ;;  %v1718_v48 = vpop.permute.xlu1 %1717  ;;  %2279 = vmatprep.subr.msk.mxu0 %vm93_vm10, %v3095_v51  ;;  %2282 = vmatprep.subr.msk.mxu1 %vm93_vm10, %v3091_v24  ;;  %v1716_v31 = vpop.permute.xlu0 %1715  ;;  %v1746_v52 = vrot.slane %v2528_v55, %v2402_v15  ;;  %vm3133_vm3 = vcmp.eq.s32.totalorder %v3417_v3, 1 }
  0xa5   :  { %v1726_v19 = vsel %vm1723_vm1, %v1716_v31, %v1718_v48  ;;  %2280 = vmatpush1.msk.msra.mxu0 %vm93_vm10, %v3099_v8  ;;  %2283 = vmatpush1.msk.msra.mxu1 %vm93_vm10, %v3097_v29  ;;  %v1738_v63 = vrot.slane %v2528_v55, %v2398_v13  ;;  %v1742_v36 = vrot.slane %v2528_v55, %v2400_v14 }
  0xa6   :  { %v1948_v16 = vsel %vm3087_vm2, %v1726_v19, -1e+30  ;;  %2281 = vmatmul.mubr.msk.f32.vlgmr.msra.gmra.mxu0 %vm89_vm0, %v2278_v60  ;;  %2284 = vmatmul.mubr.msk.f32.vlgmr.msra.gmra.mxu1 %vm89_vm0, %v2278_v60  ;;  %v1734_v40 = vrot.slane %v2528_v55, %v2396_v12  ;;  %v3420_v34 = vrot.slane %v2532_v56, %v2398_v13  ;;  %v3423_v55 = vrot.slane %v2532_v56, %v2400_v14 }
  0xa7   :  { %v1952_v20 = vmax.f32 %v1711_v45, %v1948_v16  ;;  %1844 = vmatprep.mubr.f32.mxu0 %v3345_v11  ;;  %1915 = vmatprep.mubr.f32.mxu1 %v3345_v11  ;;  %v3426_v16 = vrot.slane %v2553_v62, %v2396_v12  ;;  %v3429_v45 = vrot.slane %v2553_v62, %v2402_v15 }
  0xa8   :  { %v1722_v43 = vpop.permute.xlu1 %1721  ;;  %vm3142_vm4 = vcmp.eq.s32.totalorder %v3420_v34, 1  ;;  %vm3149_vm5 = vcmp.eq.s32.totalorder %v3423_v55, 1  ;;  %v1720_v49 = vpop.permute.xlu0 %1719  ;;  %v3431_v56 = vrot.slane %v2553_v62, %v2398_v13 }
  0xa9   :  { %v1727_v10 = vsel %vm1723_vm1, %v1722_v43, %v1716_v31  ;;  %v1724_v47 = vsel %vm1723_vm1, %v1720_v49, %v1722_v43  ;;  %v1725_v60 = vsel %vm1723_vm1, %v1718_v48, %v1720_v49  ;;  %vm3163_vm7 = vcmp.eq.s32.totalorder %v3426_v16, 1 }
  0xaa   :  { %v3167_v3 = vmul.f32 %v1746_v52, %v1727_v10  ;;  %v1951_v34 = vsel %vm3133_vm3, %v1727_v10, -1e+30  ;;  %v3171_v55 = vmul.f32 %v1738_v63, %v1725_v60  ;;  %v3173_v31 = vmul.f32 %v1742_v36, %v1724_v47  ;;  %v2286_v52 = vld [vmem:[%s3343_s2 + $0x1c] sm:$0xf] }
  0xab   :  { %v3175_v43 = vmul.f32 %v1734_v40, %v1726_v19  ;;  %v1955_v11 = vmax.f32 %v1714_v46, %v1951_v34  ;;  %v1949_v48 = vsel %vm3142_vm4, %v1725_v60, -1e+30  ;;  %v1950_v49 = vsel %vm3149_vm5, %v1724_v47, -1e+30 }
  0xac   :  { %v1953_v16 = vmax.f32 %v1712_v41, %v1949_v48  ;;  %v1954_v25 = vmax.f32 %v1713_v21, %v1950_v49  ;;  %v1959_v10 = vpop.permute.xlu1 %1958  ;;  %2287 = vmatprep.subr.msk.mxu0 %vm93_vm10, %v3171_v55  ;;  %2290 = vmatprep.subr.msk.mxu1 %vm93_vm10, %v3167_v3  ;;  %v1957_v46 = vpop.permute.xlu0 %1956  ;;  %v1987_v21 = vrot.slane %v2549_v61, %v2402_v15  ;;  %vm2188_vm8 = vcmp.eq.s32.totalorder %v3429_v45, 1 }
  0xad   :  { %v1967_v19 = vsel %vm1964_vm6, %v1957_v46, %v1959_v10  ;;  %2288 = vmatpush1.msk.msra.mxu0 %vm93_vm10, %v3175_v43  ;;  %2291 = vmatpush1.msk.msra.mxu1 %vm93_vm10, %v3173_v31  ;;  %v1979_v63 = vrot.slane %v2549_v61, %v2398_v13  ;;  %v1983_v36 = vrot.slane %v2549_v61, %v2400_v14  ;;  %v3430_v47 = vmov 0.0  }
  0xae   :  { %v2189_v41 = vsel %vm3163_vm7, %v1967_v19, -1e+30  ;;  %2289 = vmatmul.mubr.msk.f32.vlgmr.msra.gmra.mxu0 %vm89_vm0, %v2286_v52  ;;  %2292 = vmatmul.mubr.msk.f32.vlgmr.msra.gmra.mxu1 %vm89_vm0, %v2286_v52  ;;  %v1975_v40 = vrot.slane %v2549_v61, %v2396_v12  ;;  %vm2186_vm9 = vcmp.eq.s32.totalorder %v3431_v56, 1  ;;  %v3432_v34 = vrot.slane %v2553_v62, %v2400_v14 }
  0xaf   :  { %v3206_v50 = vmax.f32 %v1952_v20, %v2189_v41  ;;  %2085 = vmatprep.mubr.f32.mxu0 %v3430_v47  ;;  %2156 = vmatprep.mubr.f32.mxu1 %v3430_v47 }
  0xb0   :  { %v1963_v60 = vpop.permute.xlu1 %1962  ;;  %vm2187_vm11 = vcmp.eq.s32.totalorder %v3432_v34, 1  ;;  %v1961_v12 = vpop.permute.xlu0 %1960  ;;  %v3231_v41 = vmul.f32 %v1975_v40, %v1967_v19 }
  0xb1   :  { %v1968_v61 = vsel %vm1964_vm6, %v1963_v60, %v1957_v46  ;;  %v1965_v15 = vsel %vm1964_vm6, %v1961_v12, %v1963_v60  ;;  %v1966_v20 = vsel %vm1964_vm6, %v1959_v10, %v1961_v12  ;;  %v2294_v46 = vld [vmem:[%s3343_s2 + $0x20] sm:$0xf] }
  0xb2   :  { %v3225_v48 = vmul.f32 %v1987_v21, %v1968_v61  ;;  %v2192_v49 = vsel %vm2188_vm8, %v1968_v61, -1e+30  ;;  %v3227_v52 = vmul.f32 %v1979_v63, %v1966_v20  ;;  %v3229_v13 = vmul.f32 %v1983_v36, %v1965_v15 }
  0xb3   :  { %v3233_v14 = vmax.f32 %v1955_v11, %v2192_v49  ;;  %v2190_v62 = vsel %vm2186_vm9, %v1966_v20, -1e+30  ;;  %v2191_v45 = vsel %vm2187_vm11, %v1965_v15, -1e+30 }
  0xb4   :  { %v3238_v47 = vmax.f32 %v1953_v16, %v2190_v62  ;;  %v3240_v4 = vmax.f32 %v1954_v25, %v2191_v45  ;;  %2295 = vmatprep.subr.msk.mxu0 %vm93_vm10, %v3227_v52  ;;  %2298 = vmatprep.subr.msk.mxu1 %vm93_vm10, %v3225_v48 }
  0xb5   :  { %2296 = vmatpush1.msk.msra.mxu0 %vm93_vm10, %v3231_v41  ;;  %2299 = vmatpush1.msk.msra.mxu1 %vm93_vm10, %v3229_v13 }
  0xb6   :  { %2297 = vmatmul.mubr.msk.f32.vlgmr.msra.gmra.mxu0 %vm89_vm0, %v2294_v46  ;;  %2300 = vmatmul.mubr.msk.f32.vlgmr.msra.gmra.mxu1 %vm89_vm0, %v2294_v46 }
  0xbd   :  { %v3252_v11 = vpop.permute.xlu1 %77  ;;  %v23_v16 = vpop.permute.xlu0 %22 }
  0xbe   :  { %v33_v25 = vmul.f32 %v23_v16, %v2361_v1  ;;  %v82_v10 = vmul.f32 %v3252_v11, %v2629_v7  ;;  %v31_v19 = vmul.f32 %v23_v16, %v2366_v2  ;;  %v80_v21 = vmul.f32 %v3252_v11, %v2634_v57 }
  0xbf   :  { %v34_v63 = vmul.f32 %v2373_v5, %v23_v16  ;;  %v83_v36 = vmul.f32 %v3252_v11, %v2638_v44  ;;  %v32_v60 = vmul.f32 %v2377_v6, %v23_v16  ;;  %v81_v56 = vmul.f32 %v3252_v11, %v2649_v0 }
  0xc0   :  { %v86_v40 = vadd.f32 %v82_v10, %v33_v25  ;;  %v84_v1 = vadd.f32 %v80_v21, %v31_v19  ;;  %v324_v2 = vmul.f32 %v2721_v38, %v3252_v11  ;;  %v322_v5 = vmul.f32 %v2717_v54, %v3252_v11 }
  0xc1   :  { %v87_v57 = vadd.f32 %v83_v36, %v34_v63  ;;  %v85_v44 = vadd.f32 %v81_v56, %v32_v60  ;;  %v325_v46 = vmul.f32 %v2723_v58, %v3252_v11  ;;  %v323_v38 = vmul.f32 %v2668_v17, %v3252_v11 }
  0xc2   :  { %v563_v10 = vmul.f32 %v2816_v18, %v3252_v11  ;;  %v565_v63 = vmul.f32 %v2820_v28, %v3252_v11  ;;  %v566_v58 = vmul.f32 %v2822_v32, %v3252_v11  ;;  %v564_v17 = vmul.f32 %v2760_v23, %v3252_v11 }
  0xc3   :  { %v804_v28 = vmul.f32 %v2923_v26, %v3252_v11  ;;  %v1036_v26 = vmul.f32 %v2814_v35, %v3252_v11  ;;  %v1039_v35 = vmul.f32 %v2947_v59, %v3252_v11 }
 0x13f   :  { %v243_v34 = vpop.f32.mrf.mxu1  ;;  %v172_v12 = vpop.f32.mrf.mxu0 }
 0x140   :  { %v250_v7 = vadd.f32 %v243_v34, %v86_v40  ;;  %v248_v61 = vadd.f32 %v172_v12, %v84_v1 }
 0x141   :  { %v245_v15 = vpop.f32.mrf.mxu1  ;;  %v174_v20 = vpop.f32.mrf.mxu0 }
 0x142   :  { %v328_v49 = vadd.f32 %v324_v2, %v250_v7  ;;  %v251_v6 = vadd.f32 %v245_v15, %v87_v57  ;;  %v326_v62 = vadd.f32 %v322_v5, %v248_v61  ;;  %v249_v45 = vadd.f32 %v174_v20, %v85_v44 }
 0x143   :  { %v806_v5 = vmul.f32 %v2927_v39, %v3252_v11 }
 0x144   :  { %v329_v21 = vadd.f32 %v325_v46, %v251_v6  ;;  %v327_v36 = vadd.f32 %v323_v38, %v249_v45 }
 0x145   :  { %v413_v0 = vpop.f32.mrf.mxu0 }
 0x146   :  { %v489_v16 = vadd.f32 %v413_v0, %v326_v62  ;;  %v484_v25 = vpop.f32.mrf.mxu1  ;;  %v807_v62 = vmul.f32 %v2929_v37, %v3252_v11 }
 0x147   :  { %v491_v19 = vadd.f32 %v484_v25, %v328_v49  ;;  %v415_v54 = vpop.f32.mrf.mxu0  ;;  %v805_v49 = vmul.f32 %v2875_v27, %v3252_v11 }
 0x148   :  { %v486_v40 = vpop.f32.mrf.mxu1  ;;  %v567_v60 = vadd.f32 %v563_v10, %v489_v16  ;;  %v490_v34 = vadd.f32 %v415_v54, %v327_v36  ;;  %v1038_v10 = vmul.f32 %v2908_v53, %v3252_v11 }
 0x149   :  { %v492_v56 = vadd.f32 %v486_v40, %v329_v21  ;;  %v569_v1 = vadd.f32 %v565_v63, %v491_v19  ;;  %v1037_v21 = vmul.f32 %v2902_v42, %v3252_v11 }
 0x14a   :  { %v568_v61 = vadd.f32 %v564_v17, %v490_v34 }
 0x14b   :  { %v570_v12 = vadd.f32 %v566_v58, %v492_v56 }
 0x14d   :  { %v654_v18 = vpop.f32.mrf.mxu0 }
 0x14e   :  { %v730_v7 = vadd.f32 %v654_v18, %v567_v60  ;;  %v725_v2 = vpop.f32.mrf.mxu1 }
 0x14f   :  { %v732_v57 = vadd.f32 %v725_v2, %v569_v1  ;;  %v656_v15 = vpop.f32.mrf.mxu0  ;;  %v1273_v1 = vmul.f32 %v3022_v9, %v3252_v11 }
 0x150   :  { %v731_v44 = vadd.f32 %v656_v15, %v568_v61  ;;  %v727_v20 = vpop.f32.mrf.mxu1  ;;  %v808_v32 = vadd.f32 %v804_v28, %v730_v7  ;;  %v1274_v7 = vmul.f32 %v3016_v22, %v3252_v11  ;;  %v1276_v61 = vmul.f32 %v3012_v30, %v3252_v11 }
 0x151   :  { %v733_v6 = vadd.f32 %v727_v20, %v570_v12  ;;  %v810_v23 = vadd.f32 %v806_v5, %v732_v57  ;;  %v1275_v12 = vmul.f32 %v3018_v33, %v3252_v11  ;;  %v1514_v15 = vmul.f32 %v3099_v8, %v3252_v11 }
 0x152   :  { %v809_v45 = vadd.f32 %v805_v49, %v731_v44  ;;  %v1516_v20 = vmul.f32 %v3097_v29, %v3252_v11  ;;  %v1515_v22 = vmul.f32 %v3095_v51, %v3252_v11  ;;  %v1517_v30 = vmul.f32 %v3091_v24, %v3252_v11 }
 0x153   :  { %v811_v0 = vadd.f32 %v807_v62, %v733_v6  ;;  %v1755_v29 = vmul.f32 %v3175_v43, %v3252_v11  ;;  %v1756_v24 = vmul.f32 %v3171_v55, %v3252_v11 }
 0x155   :  { %v895_v46 = vpop.f32.mrf.mxu0 }
 0x156   :  { %v971_v16 = vadd.f32 %v895_v46, %v808_v32 }
 0x157   :  { %v966_v25 = vpop.f32.mrf.mxu1  ;;  %v897_v38 = vpop.f32.mrf.mxu0 }
 0x158   :  { %v973_v39 = vadd.f32 %v966_v25, %v810_v23  ;;  %v972_v19 = vadd.f32 %v897_v38, %v809_v45  ;;  %v1040_v54 = vadd.f32 %v1036_v26, %v971_v16 }
 0x159   :  { %v968_v27 = vpop.f32.mrf.mxu1  ;;  %v1123_v63 = vpop.f32.mrf.mxu0 }
 0x15a   :  { %v974_v37 = vadd.f32 %v968_v27, %v811_v0  ;;  %v1042_v36 = vadd.f32 %v1038_v10, %v973_v39  ;;  %v1199_v40 = vadd.f32 %v1123_v63, %v1040_v54  ;;  %v1041_v56 = vadd.f32 %v1037_v21, %v972_v19 }
 0x15b   :  { %v1194_v60 = vpop.f32.mrf.mxu1  ;;  %v1125_v53 = vpop.f32.mrf.mxu0  ;;  %v1757_v39 = vmul.f32 %v3173_v31, %v3252_v11  ;;  %v1758_v10 = vmul.f32 %v3167_v3, %v3252_v11  ;;  %v1996_v31 = vmul.f32 %v3231_v41, %v3252_v11  ;;  %v1997_v3 = vmul.f32 %v3227_v52, %v3252_v11 }
 0x15c   :  { %v1201_v58 = vadd.f32 %v1194_v60, %v1042_v36  ;;  %v1043_v34 = vadd.f32 %v1039_v35, %v974_v37  ;;  %v1200_v17 = vadd.f32 %v1125_v53, %v1041_v56  ;;  %v1277_v18 = vadd.f32 %v1273_v1, %v1199_v40 }
 0x15d   :  { %v1196_v42 = vpop.f32.mrf.mxu1  ;;  %v1998_v60 = vmul.f32 %v3229_v13, %v3252_v11  ;;  %v1999_v1 = vmul.f32 %v3225_v48, %v3252_v11 }
 0x15e   :  { %v1202_v2 = vadd.f32 %v1196_v42, %v1043_v34  ;;  %v1279_v59 = vadd.f32 %v1275_v12, %v1201_v58  ;;  %v1278_v9 = vadd.f32 %v1274_v7, %v1200_v17 }
 0x15f   :  { %v1364_v28 = vpop.f32.mrf.mxu0  ;;  %v1435_v57 = vpop.f32.mrf.mxu1 }
 0x160   :  { %v1440_v5 = vadd.f32 %v1364_v28, %v1277_v18  ;;  %v1442_v44 = vadd.f32 %v1435_v57, %v1279_v59  ;;  %v1280_v33 = vadd.f32 %v1276_v61, %v1202_v2  ;;  %v2199_v18 = vpop.permute.xlu1 %2198 }
 0x161   :  { %v1366_v32 = vpop.f32.mrf.mxu0  ;;  %v1437_v49 = vpop.f32.mrf.mxu1  ;;  %v2201_v2 = vmul.f32 %v2199_v18, %v3206_v50  ;;  %v2203_v13 = vmul.f32 %v2199_v18, %v3240_v4  ;;  %v2202_v52 = vmul.f32 %v2199_v18, %v3238_v47  ;;  %v2204_v28 = vmul.f32 %v2199_v18, %v3233_v14 }
 0x162   :  { %v1441_v6 = vadd.f32 %v1366_v32, %v1278_v9  ;;  %v1443_v23 = vadd.f32 %v1437_v49, %v1280_v33  ;;  %v1518_v62 = vadd.f32 %v1514_v15, %v1440_v5  ;;  %v1520_v45 = vadd.f32 %v1516_v20, %v1442_v44  ;;  %v2211_v44 = vpop.permute.xlu0 %2210 }
 0x164   :  { %v1519_v0 = vadd.f32 %v1515_v22, %v1441_v6  ;;  %v1521_v8 = vadd.f32 %v1517_v30, %v1443_v23 }
 0x166   :  { %v1605_v26 = vpop.f32.mrf.mxu0  ;;  %v1676_v46 = vpop.f32.mrf.mxu1 }
 0x167   :  { %v1681_v16 = vadd.f32 %v1605_v26, %v1518_v62  ;;  %v1683_v25 = vadd.f32 %v1676_v46, %v1520_v45 }
 0x168   :  { %v1607_v51 = vpop.f32.mrf.mxu0  ;;  %v1678_v38 = vpop.f32.mrf.mxu1 }
 0x169   :  { %v1682_v19 = vadd.f32 %v1607_v51, %v1519_v0  ;;  %v1684_v27 = vadd.f32 %v1678_v38, %v1521_v8  ;;  %v1759_v54 = vadd.f32 %v1755_v29, %v1681_v16  ;;  %v1761_v21 = vadd.f32 %v1757_v39, %v1683_v25 }
 0x16b   :  { %v1760_v37 = vadd.f32 %v1756_v24, %v1682_v19  ;;  %v1762_v63 = vadd.f32 %v1758_v10, %v1684_v27 }
 0x16e   :  { %v1846_v36 = vpop.f32.mrf.mxu0  ;;  %v1917_v35 = vpop.f32.mrf.mxu1 }
 0x16f   :  { %v1922_v43 = vadd.f32 %v1846_v36, %v1759_v54  ;;  %v1924_v40 = vadd.f32 %v1917_v35, %v1761_v21 }
 0x170   :  { %v1848_v55 = vpop.f32.mrf.mxu0  ;;  %v1919_v56 = vpop.f32.mrf.mxu1 }
 0x171   :  { %v1923_v58 = vadd.f32 %v1848_v55, %v1760_v37  ;;  %v1925_v53 = vadd.f32 %v1919_v56, %v1762_v63  ;;  %v2000_v34 = vadd.f32 %v1996_v31, %v1922_v43  ;;  %v2002_v12 = vadd.f32 %v1998_v60, %v1924_v40 }
 0x173   :  { %v2001_v17 = vadd.f32 %v1997_v3, %v1923_v58  ;;  %v2003_v42 = vadd.f32 %v1999_v1, %v1925_v53 }
 0x176   :  { %v2087_v7 = vpop.f32.mrf.mxu0  ;;  %v2158_v41 = vpop.f32.mrf.mxu1 }
 0x177   :  { %v2163_v59 = vadd.f32 %v2087_v7, %v2000_v34  ;;  %v2165_v61 = vadd.f32 %v2158_v41, %v2002_v12 }
 0x178   :  { %v2089_v48 = vpop.f32.mrf.mxu0  ;;  %v2160_v11 = vpop.f32.mrf.mxu1 }
 0x179   :  { %v2205_v57 = vadd.f32 %v2201_v2, %v2163_v59  ;;  %v2207_v9 = vadd.f32 %v2203_v13, %v2165_v61  ;;  %v2164_v15 = vadd.f32 %v2089_v48, %v2001_v17  ;;  %v2166_v5 = vadd.f32 %v2160_v11, %v2003_v42 }
 0x17b   :  { %v2206_v33 = vadd.f32 %v2202_v52, %v2164_v15  ;;  %v2208_v20 = vadd.f32 %v2204_v28, %v2166_v5  ;;  %v2213_v32 = vadd.f32 %v2211_v44, %v2205_v57  ;;  %v2215_v50 = vadd.f32 %v2211_v44, %v2207_v9 }
 0x17d   :  { %v2214_v49 = vadd.f32 %v2211_v44, %v2206_v33  ;;  %v2216_v22 = vadd.f32 %v2211_v44, %v2208_v20 }
 0x17f   :  { %v2221_v4 = vcombine.low %v2213_v32, %v2214_v49  ;;  %v2222_v30 = vcombine.low %v2215_v50, %v2216_v22 }
 0x181   :  { %2225 = vst [vmem:[%s3344_s4] sm:$0xff] %v2221_v4  ;;  %2226 = vst [vmem:[%s3344_s4 + $0x8] sm:$0xff] %v2222_v30 }

</bundles_post_ra>
